<compile_context>
chip_gen: v5e
topology: v5e:2x2
jax: 0.10.0
libtpu: 0.0.40
codegen_flags: <defaults>
</compile_context>

<pallas_src>
import functools
import numpy as np

import jax
import jax.numpy as jnp
from jax.experimental import pallas as pl
from jax.experimental.pallas import tpu as pltpu

# ----------------------------- configuration --------------------------------
EMB = 32           # embedding_size
N_ITER = 1         # n_iter
AGG = "sum"        # aggregator
UPDATE_TYPE = "hidden_out"
BATCH = 16
BLOCK_B = 8        # batch rows per grid step (raise so block_B*P >= ~256 rows
                   # at production batch sizes; toy-sized here)
N_PATHS = 4        # paths per entity in link_path[hop]
N_USER = 32
N_ENTITY = 64
N_RELATION = 16


# ------------------------------ fused Pallas kernel --------------------------
def fused_ktrn_kernel(*refs, n_iter, n_paths):
    """One batch-block of the KTRN forward.

    Input refs (per grid step):
      users     [bB, 1]  i32    users_rep [bBP, 1] i32    items [bB, 1] i32
      ratings   [bB, 1]  f32
      user_tab  [n_user, D]     f32   (grid-invariant, resident)
      ent_tab   [n_entity, D]   f32   (grid-invariant, resident)
      rel_tab   [n_relation, D] f32   (grid-invariant, resident)
      w_agg [D, D] f32   b_agg [1, D] f32                  (grid-invariant)
      per hop h:
        ent_idx [T*bBP, 1] i32   (timestep-major: seed row-block, then tails)
        rel_idx [(T-1)*bBP, 1] i32
        wl, wr, whh [4, D, D] bf16   (per-gate split, PyTorch order i, f, g, o)
        bias        [4, 1, D] f32
    Output refs:
      scores [bB, 1] f32, bce [bB, 1] f32  (mean of bce is taken outside).
    """
    n_fixed = 9
    (users_ref, users_rep_ref, items_ref, ratings_ref,
     user_tab_ref, ent_tab_ref, rel_tab_ref,
     w_agg_ref, b_agg_ref) = refs[:n_fixed]
    hop_refs = refs[n_fixed:n_fixed + 6 * n_iter]
    scores_ref, bce_ref = refs[n_fixed + 6 * n_iter:]

    bB = users_ref.shape[0]
    bBP = users_rep_ref.shape[0]
    n_user = user_tab_ref.shape[0]
    n_entity = ent_tab_ref.shape[0]
    n_relation = rel_tab_ref.shape[0]

    user_tab = user_tab_ref[...]
    ent_tab = ent_tab_ref[...]
    rel_tab = rel_tab_ref[...]

    def gather(idx_col_ref, table, ncls):
        # One-hot @ table on the MXU (exact: tables stay f32).
        # NOTE: out-of-range indices silently return a zero embedding.
        # TODO(synk): for realistic KG table sizes (v7x has only 64 MiB VMEM)
        #             switch to scalar-prefetch / manual-DMA row gathers from
        #             HBM-resident tables instead of resident one-hot matmuls.
        idx = idx_col_ref[...]
        rows = idx.shape[0]
        lane = jax.lax.broadcasted_iota(jnp.int32, (rows, ncls), 1)
        oh = (lane == idx).astype(jnp.float32)
        return jnp.dot(oh, table, preferred_element_type=jnp.float32)

    u_emb = gather(users_ref, user_tab, n_user)           # [bB, D]
    u_rep = gather(users_rep_ref, user_tab, n_user)       # [bBP, D]
    it_emb = gather(items_ref, ent_tab, n_entity)         # [bB, D]

    # Path-sum selection matrix S [bB, bBP] (sum over the n_paths rows / user).
    rb = jax.lax.broadcasted_iota(jnp.int32, (bB, bBP), 0)
    cc = jax.lax.broadcasted_iota(jnp.int32, (bB, bBP), 1)
    S = jnp.logical_and(cc >= rb * n_paths,
                        cc < (rb + 1) * n_paths).astype(jnp.float32)

    for h in range(n_iter):
        (ent_idx_ref, rel_idx_ref,
         wl_ref, wr_ref, whh_ref, b_ref) = hop_refs[6 * h:6 * h + 6]
        T = h + 2

        # Batched gathers: ONE one-hot + ONE matmul per table for the whole
        # (timestep-major) sequence of this hop.
        r_all = gather(ent_idx_ref, ent_tab, n_entity)        # [T*bBP, D]
        rel_all = gather(rel_idx_ref, rel_tab, n_relation)    # [(T-1)*bBP, D]
        l_all = jnp.concatenate([u_rep, rel_all], axis=0)     # [T*bBP, D]

        l16 = l_all.astype(jnp.bfloat16)
        r16 = r_all.astype(jnp.bfloat16)
        wl = wl_ref[...]       # [4, D, D] bf16
        wr = wr_ref[...]       # [4, D, D] bf16
        whh = whh_ref[...]     # [4, D, D] bf16
        bias = b_ref[...]      # [4, 1, D] f32

        # Hoisted per-gate input projections; every operand at lane offset 0.
        pre = [jnp.dot(l16, wl[g], preferred_element_type=jnp.float32)
               + jnp.dot(r16, wr[g], preferred_element_type=jnp.float32)
               + bias[g]
               for g in range(4)]                              # 4 x [T*bBP, D]

        # Recurrence (T is tiny and static — Python unroll).
        h_st = None
        c_st = None
        for t in range(T):
            lo = t * bBP
            g_i = pre[0][lo:lo + bBP]
            g_f = pre[1][lo:lo + bBP]
            g_g = pre[2][lo:lo + bBP]
            g_o = pre[3][lo:lo + bBP]
            if t > 0:  # h0 == 0 -> skip recurrent matmuls at t == 0
                h16 = h_st.astype(jnp.bfloat16)
                g_i = g_i + jnp.dot(h16, whh[0], preferred_element_type=jnp.float32)
                g_f = g_f + jnp.dot(h16, whh[1], preferred_element_type=jnp.float32)
                g_g = g_g + jnp.dot(h16, whh[2], preferred_element_type=jnp.float32)
                g_o = g_o + jnp.dot(h16, whh[3], preferred_element_type=jnp.float32)
            i_g = jax.nn.sigmoid(g_i)          # element-wise gate math in f32
            f_g = jax.nn.sigmoid(g_f)
            c_g = jnp.tanh(g_g)
            o_g = jax.nn.sigmoid(g_o)
            c_st = i_g * c_g if t == 0 else f_g * c_st + i_g * c_g
            h_st = o_g * jnp.tanh(c_st)

        # update_type='hidden_out' + aggregator='sum'
        final_out = jnp.dot(S, h_st, preferred_element_type=jnp.float32)  # [bB, D]
        it_emb = (jnp.dot(it_emb + final_out, w_agg_ref[...],
                          preferred_element_type=jnp.float32) + b_agg_ref[...])

    # score + numerically stable per-example BCE (== BCELoss(sigmoid(s), y))
    s = jnp.sum(u_emb * it_emb, axis=-1, keepdims=True)       # [bB, 1]
    scores_ref[...] = jax.nn.sigmoid(s)
    y = ratings_ref[...]
    bce_ref[...] = (jnp.maximum(s, 0.0) - s * y
                    + jnp.log(1.0 + jnp.exp(-jnp.abs(s))))
    # TODO(synk): for production B, emit scores/bce as lane-dense [1, block_B]
    #             slabs (block_B a multiple of 128) instead of [block_B, 1].


# --------------------------- pallas_call wrapper ------------------------------
def _full_spec(x):
    """Grid-invariant full-array block: DMA'd once, stays VMEM-resident."""
    nd = x.ndim

    def idx(i):
        return (0,) * nd

    return pl.BlockSpec(x.shape, idx)


def _cost_estimate(B, P, D, n_iter, n_user, n_entity, n_relation, inputs):
    BP = B * P
    flops = 2 * B * n_user * D + 2 * BP * n_user * D + 2 * B * n_entity * D
    trans = 4 * B
    for h in range(n_iter):
        T = h + 2
        flops += 2 * T * BP * n_entity * D            # batched entity gather
        flops += 2 * (T - 1) * BP * n_relation * D    # batched relation gather
        flops += 2 * T * BP * (2 * D) * (4 * D)       # hoisted input projection
        flops += 2 * (T - 1) * BP * D * (4 * D)       # recurrent matmuls
        flops += 2 * B * BP * D + 2 * B * D * D       # path-sum + agg linear
        trans += T * BP * 5 * D                       # gate sigmoids / tanhs
    bytes_acc = sum(int(np.prod(x.shape)) * x.dtype.itemsize for x in inputs)
    bytes_acc += 2 * B * 4                            # scores + bce outputs
    return pl.CostEstimate(flops=int(flops), transcendentals=int(trans),
                           bytes_accessed=int(bytes_acc))


def run_ktrn_fused(users, items, ratings_col, item_links_list, params,
                   block_b=BLOCK_B):
    assert UPDATE_TYPE == "hidden_out"   # TODO(synk): 'probs' update_type
    assert AGG == "sum"                  # TODO(synk): 'con'/'bi'/'no' aggregators
    B = users.shape[0]
    D = EMB
    n_iter = len(item_links_list)
    P = item_links_list[0].shape[1]
    for il in item_links_list:
        assert il.shape[1] == P          # TODO(synk): per-hop path counts
    assert B % block_b == 0
    n_blocks = B // block_b
    block_bp = block_b * P

    users_i = users.astype(jnp.int32)
    inputs = [
        users_i.reshape(B, 1),
        jnp.repeat(users_i, P).reshape(B * P, 1),   # pre-repeated per path
        items.reshape(B, 1).astype(jnp.int32),
        ratings_col.astype(jnp.float32),
        params["user_emb"], params["entity_emb"], params["relation_emb"],
        params["w_agg_sum"], params["b_agg_sum"],
    ]
    in_specs = [
        pl.BlockSpec((block_b, 1), lambda i: (i, 0)),
        pl.BlockSpec((block_bp, 1), lambda i: (i, 0)),
        pl.BlockSpec((block_b, 1), lambda i: (i, 0)),
        pl.BlockSpec((block_b, 1), lambda i: (i, 0)),
    ] + [_full_spec(x) for x in inputs[4:]]

    for h in range(n_iter):
        T = h + 2
        il = item_links_list[h].astype(jnp.int32)   # [B, P, 2T-1]
        # Entity (seed+tail) and relation columns, reordered to
        # (block, timestep, batch-row-in-block, path) so each grid block sees a
        # contiguous timestep-major index slab (wrapper-side layout plumbing).
        ent_idx = (il[:, :, 0::2].reshape(n_blocks, block_b, P, T)
                   .transpose(0, 3, 1, 2).reshape(-1, 1))
        rel_idx = (il[:, :, 1::2].reshape(n_blocks, block_b, P, T - 1)
                   .transpose(0, 3, 1, 2).reshape(-1, 1))

        lw = params["lstm"][h]
        w_ih, w_hh, b = lw["w_ih"], lw["w_hh"], lw["b"]
        # Split per gate (PyTorch order i, f, g, o) and into left/right input
        # halves; bf16 for the MXU (gate math and tables stay f32).
        wl = jnp.stack([w_ih[:D, g * D:(g + 1) * D]
                        for g in range(4)]).astype(jnp.bfloat16)
        wr = jnp.stack([w_ih[D:, g * D:(g + 1) * D]
                        for g in range(4)]).astype(jnp.bfloat16)
        whh = jnp.stack([w_hh[:, g * D:(g + 1) * D]
                         for g in range(4)]).astype(jnp.bfloat16)
        bias = jnp.stack([b[:, g * D:(g + 1) * D] for g in range(4)])  # f32

        inputs += [ent_idx, rel_idx, wl, wr, whh, bias]
        in_specs += [
            pl.BlockSpec((T * block_bp, 1), lambda i: (i, 0)),
            pl.BlockSpec(((T - 1) * block_bp, 1), lambda i: (i, 0)),
            _full_spec(wl), _full_spec(wr), _full_spec(whh), _full_spec(bias),
        ]

    n_user = params["user_emb"].shape[0]
    n_entity = params["entity_emb"].shape[0]
    n_relation = params["relation_emb"].shape[0]
    kernel = functools.partial(fused_ktrn_kernel, n_iter=n_iter, n_paths=P)

    scores, bce = pl.pallas_call(
        kernel,
        grid=(n_blocks,),
        out_shape=(jax.ShapeDtypeStruct((B, 1), jnp.float32),
                   jax.ShapeDtypeStruct((B, 1), jnp.float32)),
        in_specs=in_specs,
        out_specs=(pl.BlockSpec((block_b, 1), lambda i: (i, 0)),
                   pl.BlockSpec((block_b, 1), lambda i: (i, 0))),
        compiler_params=pltpu.CompilerParams(
            dimension_semantics=("parallel",)),
        cost_estimate=_cost_estimate(B, P, D, n_iter, n_user, n_entity,
                                     n_relation, inputs),
    )(*inputs)

    loss = jnp.mean(bce)   # BCE mean finished outside the (parallel) grid
    return scores, loss


# ----------------------- plain-JAX reference (for check) ---------------------
def lstm_last_hidden_ref(x, w_ih, w_hh, b):
    N, T, _ = x.shape
    D = w_hh.shape[0]
    h = jnp.zeros((N, D), jnp.float32)
    c = jnp.zeros((N, D), jnp.float32)
    for t in range(T):
        gates = x[:, t, :] @ w_ih + h @ w_hh + b
        i = jax.nn.sigmoid(gates[:, :D])
        f = jax.nn.sigmoid(gates[:, D:2 * D])
        g = jnp.tanh(gates[:, 2 * D:3 * D])
        o = jax.nn.sigmoid(gates[:, 3 * D:])
        c = f * c + i * g
        h = o * jnp.tanh(c)
    return h


def hop_agg_ref(h_last, items_emb, w, b):
    return (items_emb + h_last.sum(axis=1)) @ w + b


def score_loss_ref(users_emb, items_emb, ratings):
    s = jnp.sum(users_emb * items_emb, axis=-1, keepdims=True)
    p = jax.nn.sigmoid(s)
    bce = jnp.maximum(s, 0.0) - s * ratings + jnp.log(1.0 + jnp.exp(-jnp.abs(s)))
    return p, jnp.mean(bce)


# ------------------------------ KTRN forward ---------------------------------
def ktrn_forward(params, link_path, train_data, use_pallas=True):
    """Mirrors KTRN.forward: returns (loss, scores_normalized, items)."""
    users = train_data[:, 0]
    items = train_data[:, 1]
    ratings = train_data[:, 2].astype(jnp.float32)
    B = users.shape[0]
    D = EMB

    if use_pallas:
        # Tiny integer index prep stays in XLA; all dense compute runs in the
        # single fused Pallas kernel (embedding gathers done in-kernel).
        item_links_list = [link_path[hop][items] for hop in range(len(link_path))]
        scores, loss = run_ktrn_fused(users, items, ratings.reshape(B, 1),
                                      item_links_list, params)
        return loss, scores[:, 0], items

    # ------------------------ pure-JAX reference path -----------------------
    users_emb = params["user_emb"][users]
    items_emb = params["entity_emb"][items]
    for hop in range(len(link_path)):
        hop_link = link_path[hop]
        P = hop_link.shape[1]
        item_links = hop_link[items]
        users_emb_hop = jnp.repeat(users_emb, P, axis=0)
        seed_emb = params["entity_emb"][item_links[:, :, 0]].reshape(-1, D)
        seq = [jnp.concatenate([users_emb_hop, seed_emb], axis=1)]
        for j in range(1, 2 * (hop + 1) + 1):
            if j % 2 == 1:
                rel_emb = params["relation_emb"][item_links[:, :, j]].reshape(-1, D)
                tail_emb = params["entity_emb"][item_links[:, :, j + 1]].reshape(-1, D)
                seq.append(jnp.concatenate([rel_emb, tail_emb], axis=1))
        x = jnp.stack(seq, axis=1)
        lw = params["lstm"][hop]
        h_last = lstm_last_hidden_ref(x, lw["w_ih"], lw["w_hh"], lw["b"])
        if UPDATE_TYPE != "hidden_out":
            raise NotImplementedError  # TODO(synk): 'probs' update_type
        h_last = h_last.reshape(B, P, D)
        if AGG != "sum":
            raise NotImplementedError  # TODO(synk): 'con'/'bi'/'no' aggregators
        items_emb = hop_agg_ref(h_last, items_emb,
                                params["w_agg_sum"], params["b_agg_sum"])
    scores, loss = score_loss_ref(users_emb, items_emb, ratings.reshape(B, 1))
    return loss, scores[:, 0], items


# ------------------------------- parameter init ------------------------------
def init_params(key):
    ks = jax.random.split(key, 8 + 3 * N_ITER)
    scale = 0.1
    params = {
        "user_emb": scale * jax.random.normal(ks[0], (N_USER, EMB), jnp.float32),
        "entity_emb": scale * jax.random.normal(ks[1], (N_ENTITY, EMB), jnp.float32),
        "relation_emb": scale * jax.random.normal(ks[2], (N_RELATION, EMB), jnp.float32),
        # agg_sum: Linear(EMB, EMB); stored as [in, out] + [1, out]
        "w_agg_sum": scale * jax.random.normal(ks[3], (EMB, EMB), jnp.float32),
        "b_agg_sum": scale * jax.random.normal(ks[4], (1, EMB), jnp.float32),
        "lstm": [],
    }
    k_lstm = 1.0 / np.sqrt(EMB)
    for hop in range(N_ITER):
        a, b, c = ks[5 + 3 * hop], ks[6 + 3 * hop], ks[7 + 3 * hop]
        params["lstm"].append({
            # PyTorch gate order (i, f, g, o); b = b_ih + b_hh
            "w_ih": jax.random.uniform(a, (2 * EMB, 4 * EMB), jnp.float32,
                                       -k_lstm, k_lstm),
            "w_hh": jax.random.uniform(b, (EMB, 4 * EMB), jnp.float32,
                                       -k_lstm, k_lstm),
            "b": jax.random.uniform(c, (1, 4 * EMB), jnp.float32,
                                    -2 * k_lstm, 2 * k_lstm),
        })
    return params


def make_link_path(key):
    """link_path[hop]: [n_entity, n_paths, 2*(hop+1)+1] of indices
       (seed, rel, tail, rel, tail, ...)."""
    link_path = []
    for hop in range(N_ITER):
        L = 2 * (hop + 1) + 1
        ks = jax.random.split(jax.random.fold_in(key, hop), L)
        cols = []
        for j in range(L):
            hi = N_RELATION if (j % 2 == 1) else N_ENTITY
            cols.append(jax.random.randint(ks[j], (N_ENTITY, N_PATHS), 0, hi,
                                           dtype=jnp.int32))
        link_path.append(jnp.stack(cols, axis=-1))
    return link_path


# ----------------------------------- main ------------------------------------
if __name__ == "__main__":
    key = jax.random.PRNGKey(0)
    k_par, k_link, k_u, k_i, k_r = jax.random.split(key, 5)

    params = init_params(k_par)
    link_path = make_link_path(k_link)

    users = jax.random.randint(k_u, (BATCH,), 0, N_USER, dtype=jnp.int32)
    items = jax.random.randint(k_i, (BATCH,), 0, N_ENTITY, dtype=jnp.int32)
    ratings = jax.random.randint(k_r, (BATCH,), 0, 2, dtype=jnp.int32)
    train_data = jnp.stack([users, items, ratings], axis=1)   # [B, 3] int32

    # Fused Pallas path (grid over batch blocks)
    loss, scores, out_items = ktrn_forward(params, link_path, train_data,
                                           use_pallas=True)
    jax.block_until_ready((loss, scores, out_items))

    # Plain-JAX reference check (bf16 is only used for LSTM MXU operands,
    # so the rtol below has ample margin).
    ref_loss, ref_scores, _ = ktrn_forward(params, link_path, train_data,
                                           use_pallas=False)
    np.testing.assert_allclose(np.asarray(scores), np.asarray(ref_scores),
                               rtol=5e-2, atol=2e-3)
    np.testing.assert_allclose(float(loss), float(ref_loss),
                               rtol=5e-2, atol=2e-3)
    assert np.array_equal(np.asarray(out_items), np.asarray(items))

    print("KERNEL_OK")
</pallas_src>

<mosaic_0001>
module attributes {stable_mosaic.version = 11 : i64} {
  func.func @fused_ktrn_kernel(%arg0: i32, %arg1: memref<8x1xi32, #tpu.memory_space<vmem>>, %arg2: memref<32x1xi32, #tpu.memory_space<vmem>>, %arg3: memref<8x1xi32, #tpu.memory_space<vmem>>, %arg4: memref<8x1xf32, #tpu.memory_space<vmem>>, %arg5: memref<32x32xf32, #tpu.memory_space<vmem>>, %arg6: memref<64x32xf32, #tpu.memory_space<vmem>>, %arg7: memref<16x32xf32, #tpu.memory_space<vmem>>, %arg8: memref<32x32xf32, #tpu.memory_space<vmem>>, %arg9: memref<1x32xf32, #tpu.memory_space<vmem>>, %arg10: memref<64x1xi32, #tpu.memory_space<vmem>>, %arg11: memref<32x1xi32, #tpu.memory_space<vmem>>, %arg12: memref<4x32x32xbf16, #tpu.memory_space<vmem>>, %arg13: memref<4x32x32xbf16, #tpu.memory_space<vmem>>, %arg14: memref<4x32x32xbf16, #tpu.memory_space<vmem>>, %arg15: memref<4x1x32xf32, #tpu.memory_space<vmem>>, %arg16: memref<8x1xf32, #tpu.memory_space<vmem>>, %arg17: memref<8x1xf32, #tpu.memory_space<vmem>>) attributes {dimension_semantics = [#tpu.dimension_semantics<parallel>], iteration_bounds = array<i64: 2>, scalar_prefetch = 0 : i64, scratch_operands = 0 : i64, tpu.core_type = #tpu.core_type<tc>, window_params = [{transform_indices = @transform_0, window_bounds = array<i64: 8, 1>}, {transform_indices = @transform_1, window_bounds = array<i64: 32, 1>}, {transform_indices = @transform_2, window_bounds = array<i64: 8, 1>}, {transform_indices = @transform_3, window_bounds = array<i64: 8, 1>}, {pipeline_mode = #tpu.pipeline_mode<synchronous>, transform_indices = @transform_4, window_bounds = array<i64: 32, 32>}, {pipeline_mode = #tpu.pipeline_mode<synchronous>, transform_indices = @transform_5, window_bounds = array<i64: 64, 32>}, {pipeline_mode = #tpu.pipeline_mode<synchronous>, transform_indices = @transform_6, window_bounds = array<i64: 16, 32>}, {pipeline_mode = #tpu.pipeline_mode<synchronous>, transform_indices = @transform_7, window_bounds = array<i64: 32, 32>}, {pipeline_mode = #tpu.pipeline_mode<synchronous>, transform_indices = @transform_8, window_bounds = array<i64: 1, 32>}, {transform_indices = @transform_9, window_bounds = array<i64: 64, 1>}, {transform_indices = @transform_10, window_bounds = array<i64: 32, 1>}, {pipeline_mode = #tpu.pipeline_mode<synchronous>, transform_indices = @transform_11, window_bounds = array<i64: 4, 32, 32>}, {pipeline_mode = #tpu.pipeline_mode<synchronous>, transform_indices = @transform_12, window_bounds = array<i64: 4, 32, 32>}, {pipeline_mode = #tpu.pipeline_mode<synchronous>, transform_indices = @transform_13, window_bounds = array<i64: 4, 32, 32>}, {pipeline_mode = #tpu.pipeline_mode<synchronous>, transform_indices = @transform_14, window_bounds = array<i64: 4, 1, 32>}, {transform_indices = @transform_15, window_bounds = array<i64: 8, 1>}, {transform_indices = @transform_16, window_bounds = array<i64: 8, 1>}]} {
    %c0 = arith.constant 0 : index
    %c0_0 = arith.constant 0 : index
    %0 = vector.load %arg5[%c0, %c0_0] : memref<32x32xf32, #tpu.memory_space<vmem>>, vector<32x32xf32>
    %c0_1 = arith.constant 0 : index
    %c0_2 = arith.constant 0 : index
    %1 = vector.load %arg6[%c0_1, %c0_2] : memref<64x32xf32, #tpu.memory_space<vmem>>, vector<64x32xf32>
    %c0_3 = arith.constant 0 : index
    %c0_4 = arith.constant 0 : index
    %2 = vector.load %arg7[%c0_3, %c0_4] : memref<16x32xf32, #tpu.memory_space<vmem>>, vector<16x32xf32>
    %c0_5 = arith.constant 0 : index
    %c0_6 = arith.constant 0 : index
    %3 = vector.load %arg1[%c0_5, %c0_6] : memref<8x1xi32, #tpu.memory_space<vmem>>, vector<8x1xi32>
    %4 = tpu.iota {dimensions = array<i32: 1>} : vector<8x32xi32>
    %5 = vector.broadcast %3 : vector<8x1xi32> to vector<8x32xi32>
    %6 = arith.cmpi eq, %4, %5 : vector<8x32xi32>
    %7 = arith.extui %6 : vector<8x32xi1> to vector<8x32xi32>
    %8 = arith.sitofp %7 : vector<8x32xi32> to vector<8x32xf32>
    %cst = arith.constant dense<0.000000e+00> : vector<8x32xf32>
    %9 = tpu.matmul %8, %0, %cst {dimension_numbers = #tpu.dot_dimension_numbers<[1], [0], [0], [1], [0, 0, 1, 1], [], []>} : vector<8x32xf32>, vector<32x32xf32>, vector<8x32xf32> -> vector<8x32xf32>
    %c0_7 = arith.constant 0 : index
    %c0_8 = arith.constant 0 : index
    %10 = vector.load %arg2[%c0_7, %c0_8] : memref<32x1xi32, #tpu.memory_space<vmem>>, vector<32x1xi32>
    %11 = tpu.iota {dimensions = array<i32: 1>} : vector<32x32xi32>
    %12 = vector.broadcast %10 : vector<32x1xi32> to vector<32x32xi32>
    %13 = arith.cmpi eq, %11, %12 : vector<32x32xi32>
    %14 = arith.extui %13 : vector<32x32xi1> to vector<32x32xi32>
    %15 = arith.sitofp %14 : vector<32x32xi32> to vector<32x32xf32>
    %cst_9 = arith.constant dense<0.000000e+00> : vector<32x32xf32>
    %16 = tpu.matmul %15, %0, %cst_9 {dimension_numbers = #tpu.dot_dimension_numbers<[1], [0], [0], [1], [0, 0, 1, 1], [], []>} : vector<32x32xf32>, vector<32x32xf32>, vector<32x32xf32> -> vector<32x32xf32>
    %c0_10 = arith.constant 0 : index
    %c0_11 = arith.constant 0 : index
    %17 = vector.load %arg3[%c0_10, %c0_11] : memref<8x1xi32, #tpu.memory_space<vmem>>, vector<8x1xi32>
    %18 = tpu.iota {dimensions = array<i32: 1>} : vector<8x64xi32>
    %19 = vector.broadcast %17 : vector<8x1xi32> to vector<8x64xi32>
    %20 = arith.cmpi eq, %18, %19 : vector<8x64xi32>
    %21 = arith.extui %20 : vector<8x64xi1> to vector<8x64xi32>
    %22 = arith.sitofp %21 : vector<8x64xi32> to vector<8x64xf32>
    %cst_12 = arith.constant dense<0.000000e+00> : vector<8x32xf32>
    %23 = tpu.matmul %22, %1, %cst_12 {dimension_numbers = #tpu.dot_dimension_numbers<[1], [0], [0], [1], [0, 0, 1, 1], [], []>} : vector<8x64xf32>, vector<64x32xf32>, vector<8x32xf32> -> vector<8x32xf32>
    %24 = tpu.iota {dimensions = array<i32: 0>} : vector<8x32xi32>
    %25 = tpu.iota {dimensions = array<i32: 1>} : vector<8x32xi32>
    %c4_i32 = arith.constant 4 : i32
    %26 = vector.broadcast %c4_i32 : i32 to vector<8x32xi32>
    %27 = arith.muli %24, %26 : vector<8x32xi32>
    %28 = arith.cmpi sge, %25, %27 : vector<8x32xi32>
    %c1_i32 = arith.constant 1 : i32
    %29 = vector.broadcast %c1_i32 : i32 to vector<8x32xi32>
    %30 = arith.addi %24, %29 : vector<8x32xi32>
    %c4_i32_13 = arith.constant 4 : i32
    %31 = vector.broadcast %c4_i32_13 : i32 to vector<8x32xi32>
    %32 = arith.muli %30, %31 : vector<8x32xi32>
    %33 = arith.cmpi slt, %25, %32 : vector<8x32xi32>
    %34 = arith.andi %28, %33 : vector<8x32xi1>
    %35 = arith.extui %34 : vector<8x32xi1> to vector<8x32xi32>
    %36 = arith.sitofp %35 : vector<8x32xi32> to vector<8x32xf32>
    %c0_14 = arith.constant 0 : index
    %c0_15 = arith.constant 0 : index
    %37 = vector.load %arg10[%c0_14, %c0_15] : memref<64x1xi32, #tpu.memory_space<vmem>>, vector<64x1xi32>
    %38 = tpu.iota {dimensions = array<i32: 1>} : vector<64x64xi32>
    %39 = vector.broadcast %37 : vector<64x1xi32> to vector<64x64xi32>
    %40 = arith.cmpi eq, %38, %39 : vector<64x64xi32>
    %41 = arith.extui %40 : vector<64x64xi1> to vector<64x64xi32>
    %42 = arith.sitofp %41 : vector<64x64xi32> to vector<64x64xf32>
    %cst_16 = arith.constant dense<0.000000e+00> : vector<64x32xf32>
    %43 = tpu.matmul %42, %1, %cst_16 {dimension_numbers = #tpu.dot_dimension_numbers<[1], [0], [0], [1], [0, 0, 1, 1], [], []>} : vector<64x64xf32>, vector<64x32xf32>, vector<64x32xf32> -> vector<64x32xf32>
    %c0_17 = arith.constant 0 : index
    %c0_18 = arith.constant 0 : index
    %44 = vector.load %arg11[%c0_17, %c0_18] : memref<32x1xi32, #tpu.memory_space<vmem>>, vector<32x1xi32>
    %45 = tpu.iota {dimensions = array<i32: 1>} : vector<32x16xi32>
    %46 = vector.broadcast %44 : vector<32x1xi32> to vector<32x16xi32>
    %47 = arith.cmpi eq, %45, %46 : vector<32x16xi32>
    %48 = arith.extui %47 : vector<32x16xi1> to vector<32x16xi32>
    %49 = arith.sitofp %48 : vector<32x16xi32> to vector<32x16xf32>
    %cst_19 = arith.constant dense<0.000000e+00> : vector<32x32xf32>
    %50 = tpu.matmul %49, %2, %cst_19 {dimension_numbers = #tpu.dot_dimension_numbers<[1], [0], [0], [1], [0, 0, 1, 1], [], []>} : vector<32x16xf32>, vector<16x32xf32>, vector<32x32xf32> -> vector<32x32xf32>
    %51 = tpu.concatenate %16, %50 in 0 : vector<32x32xf32>, vector<32x32xf32> -> vector<64x32xf32>
    %52 = arith.truncf %51 : vector<64x32xf32> to vector<64x32xbf16>
    %53 = arith.truncf %43 : vector<64x32xf32> to vector<64x32xbf16>
    %c0_20 = arith.constant 0 : index
    %c0_21 = arith.constant 0 : index
    %c0_22 = arith.constant 0 : index
    %54 = vector.load %arg12[%c0_20, %c0_21, %c0_22] : memref<4x32x32xbf16, #tpu.memory_space<vmem>>, vector<4x32x32xbf16>
    %c0_23 = arith.constant 0 : index
    %c0_24 = arith.constant 0 : index
    %c0_25 = arith.constant 0 : index
    %55 = vector.load %arg13[%c0_23, %c0_24, %c0_25] : memref<4x32x32xbf16, #tpu.memory_space<vmem>>, vector<4x32x32xbf16>
    %c0_26 = arith.constant 0 : index
    %c0_27 = arith.constant 0 : index
    %c0_28 = arith.constant 0 : index
    %56 = vector.load %arg14[%c0_26, %c0_27, %c0_28] : memref<4x32x32xbf16, #tpu.memory_space<vmem>>, vector<4x32x32xbf16>
    %c0_29 = arith.constant 0 : index
    %c0_30 = arith.constant 0 : index
    %c0_31 = arith.constant 0 : index
    %57 = vector.load %arg15[%c0_29, %c0_30, %c0_31] : memref<4x1x32xf32, #tpu.memory_space<vmem>>, vector<4x1x32xf32>
    %58 = vector.extract_strided_slice %54 {offsets = [0, 0, 0], sizes = [1, 32, 32], strides = [1, 1, 1]} : vector<4x32x32xbf16> to vector<1x32x32xbf16>
    %59 = vector.shape_cast %58 : vector<1x32x32xbf16> to vector<32x32xbf16>
    %cst_32 = arith.constant dense<0.000000e+00> : vector<64x32xf32>
    %60 = tpu.matmul %52, %59, %cst_32 {dimension_numbers = #tpu.dot_dimension_numbers<[1], [0], [0], [1], [0, 0, 1, 1], [], []>} : vector<64x32xbf16>, vector<32x32xbf16>, vector<64x32xf32> -> vector<64x32xf32>
    %61 = vector.extract_strided_slice %55 {offsets = [0, 0, 0], sizes = [1, 32, 32], strides = [1, 1, 1]} : vector<4x32x32xbf16> to vector<1x32x32xbf16>
    %62 = vector.shape_cast %61 : vector<1x32x32xbf16> to vector<32x32xbf16>
    %cst_33 = arith.constant dense<0.000000e+00> : vector<64x32xf32>
    %63 = tpu.matmul %53, %62, %cst_33 {dimension_numbers = #tpu.dot_dimension_numbers<[1], [0], [0], [1], [0, 0, 1, 1], [], []>} : vector<64x32xbf16>, vector<32x32xbf16>, vector<64x32xf32> -> vector<64x32xf32>
    %64 = arith.addf %60, %63 : vector<64x32xf32>
    %65 = vector.extract_strided_slice %57 {offsets = [0, 0, 0], sizes = [1, 1, 32], strides = [1, 1, 1]} : vector<4x1x32xf32> to vector<1x1x32xf32>
    %66 = vector.shape_cast %65 : vector<1x1x32xf32> to vector<1x32xf32>
    %67 = vector.broadcast %66 : vector<1x32xf32> to vector<64x32xf32>
    %68 = arith.addf %64, %67 : vector<64x32xf32>
    %69 = vector.extract_strided_slice %54 {offsets = [1, 0, 0], sizes = [1, 32, 32], strides = [1, 1, 1]} : vector<4x32x32xbf16> to vector<1x32x32xbf16>
    %70 = vector.shape_cast %69 : vector<1x32x32xbf16> to vector<32x32xbf16>
    %cst_34 = arith.constant dense<0.000000e+00> : vector<64x32xf32>
    %71 = tpu.matmul %52, %70, %cst_34 {dimension_numbers = #tpu.dot_dimension_numbers<[1], [0], [0], [1], [0, 0, 1, 1], [], []>} : vector<64x32xbf16>, vector<32x32xbf16>, vector<64x32xf32> -> vector<64x32xf32>
    %72 = vector.extract_strided_slice %55 {offsets = [1, 0, 0], sizes = [1, 32, 32], strides = [1, 1, 1]} : vector<4x32x32xbf16> to vector<1x32x32xbf16>
    %73 = vector.shape_cast %72 : vector<1x32x32xbf16> to vector<32x32xbf16>
    %cst_35 = arith.constant dense<0.000000e+00> : vector<64x32xf32>
    %74 = tpu.matmul %53, %73, %cst_35 {dimension_numbers = #tpu.dot_dimension_numbers<[1], [0], [0], [1], [0, 0, 1, 1], [], []>} : vector<64x32xbf16>, vector<32x32xbf16>, vector<64x32xf32> -> vector<64x32xf32>
    %75 = arith.addf %71, %74 : vector<64x32xf32>
    %76 = vector.extract_strided_slice %57 {offsets = [1, 0, 0], sizes = [1, 1, 32], strides = [1, 1, 1]} : vector<4x1x32xf32> to vector<1x1x32xf32>
    %77 = vector.shape_cast %76 : vector<1x1x32xf32> to vector<1x32xf32>
    %78 = vector.broadcast %77 : vector<1x32xf32> to vector<64x32xf32>
    %79 = arith.addf %75, %78 : vector<64x32xf32>
    %80 = vector.extract_strided_slice %54 {offsets = [2, 0, 0], sizes = [1, 32, 32], strides = [1, 1, 1]} : vector<4x32x32xbf16> to vector<1x32x32xbf16>
    %81 = vector.shape_cast %80 : vector<1x32x32xbf16> to vector<32x32xbf16>
    %cst_36 = arith.constant dense<0.000000e+00> : vector<64x32xf32>
    %82 = tpu.matmul %52, %81, %cst_36 {dimension_numbers = #tpu.dot_dimension_numbers<[1], [0], [0], [1], [0, 0, 1, 1], [], []>} : vector<64x32xbf16>, vector<32x32xbf16>, vector<64x32xf32> -> vector<64x32xf32>
    %83 = vector.extract_strided_slice %55 {offsets = [2, 0, 0], sizes = [1, 32, 32], strides = [1, 1, 1]} : vector<4x32x32xbf16> to vector<1x32x32xbf16>
    %84 = vector.shape_cast %83 : vector<1x32x32xbf16> to vector<32x32xbf16>
    %cst_37 = arith.constant dense<0.000000e+00> : vector<64x32xf32>
    %85 = tpu.matmul %53, %84, %cst_37 {dimension_numbers = #tpu.dot_dimension_numbers<[1], [0], [0], [1], [0, 0, 1, 1], [], []>} : vector<64x32xbf16>, vector<32x32xbf16>, vector<64x32xf32> -> vector<64x32xf32>
    %86 = arith.addf %82, %85 : vector<64x32xf32>
    %87 = vector.extract_strided_slice %57 {offsets = [2, 0, 0], sizes = [1, 1, 32], strides = [1, 1, 1]} : vector<4x1x32xf32> to vector<1x1x32xf32>
    %88 = vector.shape_cast %87 : vector<1x1x32xf32> to vector<1x32xf32>
    %89 = vector.broadcast %88 : vector<1x32xf32> to vector<64x32xf32>
    %90 = arith.addf %86, %89 : vector<64x32xf32>
    %91 = vector.extract_strided_slice %54 {offsets = [3, 0, 0], sizes = [1, 32, 32], strides = [1, 1, 1]} : vector<4x32x32xbf16> to vector<1x32x32xbf16>
    %92 = vector.shape_cast %91 : vector<1x32x32xbf16> to vector<32x32xbf16>
    %cst_38 = arith.constant dense<0.000000e+00> : vector<64x32xf32>
    %93 = tpu.matmul %52, %92, %cst_38 {dimension_numbers = #tpu.dot_dimension_numbers<[1], [0], [0], [1], [0, 0, 1, 1], [], []>} : vector<64x32xbf16>, vector<32x32xbf16>, vector<64x32xf32> -> vector<64x32xf32>
    %94 = vector.extract_strided_slice %55 {offsets = [3, 0, 0], sizes = [1, 32, 32], strides = [1, 1, 1]} : vector<4x32x32xbf16> to vector<1x32x32xbf16>
    %95 = vector.shape_cast %94 : vector<1x32x32xbf16> to vector<32x32xbf16>
    %cst_39 = arith.constant dense<0.000000e+00> : vector<64x32xf32>
    %96 = tpu.matmul %53, %95, %cst_39 {dimension_numbers = #tpu.dot_dimension_numbers<[1], [0], [0], [1], [0, 0, 1, 1], [], []>} : vector<64x32xbf16>, vector<32x32xbf16>, vector<64x32xf32> -> vector<64x32xf32>
    %97 = arith.addf %93, %96 : vector<64x32xf32>
    %98 = vector.extract_strided_slice %57 {offsets = [3, 0, 0], sizes = [1, 1, 32], strides = [1, 1, 1]} : vector<4x1x32xf32> to vector<1x1x32xf32>
    %99 = vector.shape_cast %98 : vector<1x1x32xf32> to vector<1x32xf32>
    %100 = vector.broadcast %99 : vector<1x32xf32> to vector<64x32xf32>
    %101 = arith.addf %97, %100 : vector<64x32xf32>
    %102 = vector.extract_strided_slice %68 {offsets = [0, 0], sizes = [32, 32], strides = [1, 1]} : vector<64x32xf32> to vector<32x32xf32>
    %103 = vector.extract_strided_slice %90 {offsets = [0, 0], sizes = [32, 32], strides = [1, 1]} : vector<64x32xf32> to vector<32x32xf32>
    %104 = vector.extract_strided_slice %101 {offsets = [0, 0], sizes = [32, 32], strides = [1, 1]} : vector<64x32xf32> to vector<32x32xf32>
    %105 = arith.negf %102 : vector<32x32xf32>
    %106 = math.exp %105 : vector<32x32xf32>
    %cst_40 = arith.constant 1.000000e+00 : f32
    %107 = vector.broadcast %cst_40 : f32 to vector<32x32xf32>
    %108 = arith.addf %107, %106 : vector<32x32xf32>
    %109 = arith.divf %107, %108 : vector<32x32xf32>
    %110 = math.tanh %103 : vector<32x32xf32>
    %111 = arith.negf %104 : vector<32x32xf32>
    %112 = math.exp %111 : vector<32x32xf32>
    %cst_41 = arith.constant 1.000000e+00 : f32
    %113 = vector.broadcast %cst_41 : f32 to vector<32x32xf32>
    %114 = arith.addf %113, %112 : vector<32x32xf32>
    %115 = arith.divf %113, %114 : vector<32x32xf32>
    %116 = arith.mulf %109, %110 : vector<32x32xf32>
    %117 = math.tanh %116 : vector<32x32xf32>
    %118 = arith.mulf %115, %117 : vector<32x32xf32>
    %119 = vector.extract_strided_slice %68 {offsets = [32, 0], sizes = [32, 32], strides = [1, 1]} : vector<64x32xf32> to vector<32x32xf32>
    %120 = vector.extract_strided_slice %79 {offsets = [32, 0], sizes = [32, 32], strides = [1, 1]} : vector<64x32xf32> to vector<32x32xf32>
    %121 = vector.extract_strided_slice %90 {offsets = [32, 0], sizes = [32, 32], strides = [1, 1]} : vector<64x32xf32> to vector<32x32xf32>
    %122 = vector.extract_strided_slice %101 {offsets = [32, 0], sizes = [32, 32], strides = [1, 1]} : vector<64x32xf32> to vector<32x32xf32>
    %123 = arith.truncf %118 : vector<32x32xf32> to vector<32x32xbf16>
    %124 = vector.extract_strided_slice %56 {offsets = [0, 0, 0], sizes = [1, 32, 32], strides = [1, 1, 1]} : vector<4x32x32xbf16> to vector<1x32x32xbf16>
    %125 = vector.shape_cast %124 : vector<1x32x32xbf16> to vector<32x32xbf16>
    %cst_42 = arith.constant dense<0.000000e+00> : vector<32x32xf32>
    %126 = tpu.matmul %123, %125, %cst_42 {dimension_numbers = #tpu.dot_dimension_numbers<[1], [0], [0], [1], [0, 0, 1, 1], [], []>} : vector<32x32xbf16>, vector<32x32xbf16>, vector<32x32xf32> -> vector<32x32xf32>
    %127 = arith.addf %119, %126 : vector<32x32xf32>
    %128 = vector.extract_strided_slice %56 {offsets = [1, 0, 0], sizes = [1, 32, 32], strides = [1, 1, 1]} : vector<4x32x32xbf16> to vector<1x32x32xbf16>
    %129 = vector.shape_cast %128 : vector<1x32x32xbf16> to vector<32x32xbf16>
    %cst_43 = arith.constant dense<0.000000e+00> : vector<32x32xf32>
    %130 = tpu.matmul %123, %129, %cst_43 {dimension_numbers = #tpu.dot_dimension_numbers<[1], [0], [0], [1], [0, 0, 1, 1], [], []>} : vector<32x32xbf16>, vector<32x32xbf16>, vector<32x32xf32> -> vector<32x32xf32>
    %131 = arith.addf %120, %130 : vector<32x32xf32>
    %132 = vector.extract_strided_slice %56 {offsets = [2, 0, 0], sizes = [1, 32, 32], strides = [1, 1, 1]} : vector<4x32x32xbf16> to vector<1x32x32xbf16>
    %133 = vector.shape_cast %132 : vector<1x32x32xbf16> to vector<32x32xbf16>
    %cst_44 = arith.constant dense<0.000000e+00> : vector<32x32xf32>
    %134 = tpu.matmul %123, %133, %cst_44 {dimension_numbers = #tpu.dot_dimension_numbers<[1], [0], [0], [1], [0, 0, 1, 1], [], []>} : vector<32x32xbf16>, vector<32x32xbf16>, vector<32x32xf32> -> vector<32x32xf32>
    %135 = arith.addf %121, %134 : vector<32x32xf32>
    %136 = vector.extract_strided_slice %56 {offsets = [3, 0, 0], sizes = [1, 32, 32], strides = [1, 1, 1]} : vector<4x32x32xbf16> to vector<1x32x32xbf16>
    %137 = vector.shape_cast %136 : vector<1x32x32xbf16> to vector<32x32xbf16>
    %cst_45 = arith.constant dense<0.000000e+00> : vector<32x32xf32>
    %138 = tpu.matmul %123, %137, %cst_45 {dimension_numbers = #tpu.dot_dimension_numbers<[1], [0], [0], [1], [0, 0, 1, 1], [], []>} : vector<32x32xbf16>, vector<32x32xbf16>, vector<32x32xf32> -> vector<32x32xf32>
    %139 = arith.addf %122, %138 : vector<32x32xf32>
    %140 = arith.negf %127 : vector<32x32xf32>
    %141 = math.exp %140 : vector<32x32xf32>
    %cst_46 = arith.constant 1.000000e+00 : f32
    %142 = vector.broadcast %cst_46 : f32 to vector<32x32xf32>
    %143 = arith.addf %142, %141 : vector<32x32xf32>
    %144 = arith.divf %142, %143 : vector<32x32xf32>
    %145 = arith.negf %131 : vector<32x32xf32>
    %146 = math.exp %145 : vector<32x32xf32>
    %cst_47 = arith.constant 1.000000e+00 : f32
    %147 = vector.broadcast %cst_47 : f32 to vector<32x32xf32>
    %148 = arith.addf %147, %146 : vector<32x32xf32>
    %149 = arith.divf %147, %148 : vector<32x32xf32>
    %150 = math.tanh %135 : vector<32x32xf32>
    %151 = arith.negf %139 : vector<32x32xf32>
    %152 = math.exp %151 : vector<32x32xf32>
    %cst_48 = arith.constant 1.000000e+00 : f32
    %153 = vector.broadcast %cst_48 : f32 to vector<32x32xf32>
    %154 = arith.addf %153, %152 : vector<32x32xf32>
    %155 = arith.divf %153, %154 : vector<32x32xf32>
    %156 = arith.mulf %149, %116 : vector<32x32xf32>
    %157 = arith.mulf %144, %150 : vector<32x32xf32>
    %158 = arith.addf %156, %157 : vector<32x32xf32>
    %159 = math.tanh %158 : vector<32x32xf32>
    %160 = arith.mulf %155, %159 : vector<32x32xf32>
    %cst_49 = arith.constant dense<0.000000e+00> : vector<8x32xf32>
    %161 = tpu.matmul %36, %160, %cst_49 {dimension_numbers = #tpu.dot_dimension_numbers<[1], [0], [0], [1], [0, 0, 1, 1], [], []>} : vector<8x32xf32>, vector<32x32xf32>, vector<8x32xf32> -> vector<8x32xf32>
    %162 = arith.addf %23, %161 : vector<8x32xf32>
    %c0_50 = arith.constant 0 : index
    %c0_51 = arith.constant 0 : index
    %163 = vector.load %arg8[%c0_50, %c0_51] : memref<32x32xf32, #tpu.memory_space<vmem>>, vector<32x32xf32>
    %cst_52 = arith.constant dense<0.000000e+00> : vector<8x32xf32>
    %164 = tpu.matmul %162, %163, %cst_52 {dimension_numbers = #tpu.dot_dimension_numbers<[1], [0], [0], [1], [0, 0, 1, 1], [], []>} : vector<8x32xf32>, vector<32x32xf32>, vector<8x32xf32> -> vector<8x32xf32>
    %c0_53 = arith.constant 0 : index
    %c0_54 = arith.constant 0 : index
    %165 = vector.load %arg9[%c0_53, %c0_54] : memref<1x32xf32, #tpu.memory_space<vmem>>, vector<1x32xf32>
    %166 = vector.broadcast %165 : vector<1x32xf32> to vector<8x32xf32>
    %167 = arith.addf %164, %166 : vector<8x32xf32>
    %168 = arith.mulf %9, %167 : vector<8x32xf32>
    %cst_55 = arith.constant dense<0.000000e+00> : vector<8xf32>
    %169 = vector.multi_reduction <add>, %168, %cst_55 [1] : vector<8x32xf32> to vector<8xf32>
    %170 = vector.shape_cast %169 : vector<8xf32> to vector<8x1xf32>
    %171 = arith.negf %170 : vector<8x1xf32>
    %172 = math.exp %171 : vector<8x1xf32>
    %cst_56 = arith.constant 1.000000e+00 : f32
    %173 = vector.broadcast %cst_56 : f32 to vector<8x1xf32>
    %174 = arith.addf %173, %172 : vector<8x1xf32>
    %175 = arith.divf %173, %174 : vector<8x1xf32>
    %c0_57 = arith.constant 0 : index
    %c0_58 = arith.constant 0 : index
    %176 = vector.load %arg16[%c0_57, %c0_58] : memref<8x1xf32, #tpu.memory_space<vmem>>, vector<8x1xf32>
    tpu.vector_store %arg16[%c0_57, %c0_58], %175 {strides = array<i32>} : memref<8x1xf32, #tpu.memory_space<vmem>>, vector<8x1xf32>,
    %c0_59 = arith.constant 0 : index
    %c0_60 = arith.constant 0 : index
    %177 = vector.load %arg4[%c0_59, %c0_60] : memref<8x1xf32, #tpu.memory_space<vmem>>, vector<8x1xf32>
    %cst_61 = arith.constant 0.000000e+00 : f32
    %178 = vector.broadcast %cst_61 : f32 to vector<8x1xf32>
    %179 = arith.maximumf %170, %178 : vector<8x1xf32>
    %180 = arith.mulf %170, %177 : vector<8x1xf32>
    %181 = arith.subf %179, %180 : vector<8x1xf32>
    %182 = math.absf %170 : vector<8x1xf32>
    %cst_62 = arith.constant 0.000000e+00 : f32
    %183 = vector.broadcast %cst_62 : f32 to vector<8x1xf32>
    %184 = arith.subf %183, %182 : vector<8x1xf32>
    %185 = math.exp %184 : vector<8x1xf32>
    %cst_63 = arith.constant 1.000000e+00 : f32
    %186 = vector.broadcast %cst_63 : f32 to vector<8x1xf32>
    %187 = arith.addf %186, %185 : vector<8x1xf32>
    %188 = math.log %187 : vector<8x1xf32>
    %189 = arith.addf %181, %188 : vector<8x1xf32>
    %c0_64 = arith.constant 0 : index
    %c0_65 = arith.constant 0 : index
    %190 = vector.load %arg17[%c0_64, %c0_65] : memref<8x1xf32, #tpu.memory_space<vmem>>, vector<8x1xf32>
    tpu.vector_store %arg17[%c0_64, %c0_65], %189 {strides = array<i32>} : memref<8x1xf32, #tpu.memory_space<vmem>>, vector<8x1xf32>,
    return
  }
  func.func @transform_0(%arg0: i32) -> (i32, i32) {
    %c0_i32 = arith.constant 0 : i32
    %c0_i32_0 = arith.constant 0 : i32
    return %arg0, %c0_i32 : i32, i32
  }
  func.func @transform_1(%arg0: i32) -> (i32, i32) {
    %c0_i32 = arith.constant 0 : i32
    %c0_i32_0 = arith.constant 0 : i32
    return %arg0, %c0_i32 : i32, i32
  }
  func.func @transform_2(%arg0: i32) -> (i32, i32) {
    %c0_i32 = arith.constant 0 : i32
    %c0_i32_0 = arith.constant 0 : i32
    return %arg0, %c0_i32 : i32, i32
  }
  func.func @transform_3(%arg0: i32) -> (i32, i32) {
    %c0_i32 = arith.constant 0 : i32
    %c0_i32_0 = arith.constant 0 : i32
    return %arg0, %c0_i32 : i32, i32
  }
  func.func @transform_4(%arg0: i32) -> (i32, i32) {
    %c0_i32 = arith.constant 0 : i32
    %c0_i32_0 = arith.constant 0 : i32
    %c0_i32_1 = arith.constant 0 : i32
    return %c0_i32, %c0_i32_0 : i32, i32
  }
  func.func @transform_5(%arg0: i32) -> (i32, i32) {
    %c0_i32 = arith.constant 0 : i32
    %c0_i32_0 = arith.constant 0 : i32
    %c0_i32_1 = arith.constant 0 : i32
    return %c0_i32, %c0_i32_0 : i32, i32
  }
  func.func @transform_6(%arg0: i32) -> (i32, i32) {
    %c0_i32 = arith.constant 0 : i32
    %c0_i32_0 = arith.constant 0 : i32
    %c0_i32_1 = arith.constant 0 : i32
    return %c0_i32, %c0_i32_0 : i32, i32
  }
  func.func @transform_7(%arg0: i32) -> (i32, i32) {
    %c0_i32 = arith.constant 0 : i32
    %c0_i32_0 = arith.constant 0 : i32
    %c0_i32_1 = arith.constant 0 : i32
    return %c0_i32, %c0_i32_0 : i32, i32
  }
  func.func @transform_8(%arg0: i32) -> (i32, i32) {
    %c0_i32 = arith.constant 0 : i32
    %c0_i32_0 = arith.constant 0 : i32
    %c0_i32_1 = arith.constant 0 : i32
    return %c0_i32, %c0_i32_0 : i32, i32
  }
  func.func @transform_9(%arg0: i32) -> (i32, i32) {
    %c0_i32 = arith.constant 0 : i32
    %c0_i32_0 = arith.constant 0 : i32
    return %arg0, %c0_i32 : i32, i32
  }
  func.func @transform_10(%arg0: i32) -> (i32, i32) {
    %c0_i32 = arith.constant 0 : i32
    %c0_i32_0 = arith.constant 0 : i32
    return %arg0, %c0_i32 : i32, i32
  }
  func.func @transform_11(%arg0: i32) -> (i32, i32, i32) {
    %c0_i32 = arith.constant 0 : i32
    %c0_i32_0 = arith.constant 0 : i32
    %c0_i32_1 = arith.constant 0 : i32
    %c0_i32_2 = arith.constant 0 : i32
    return %c0_i32, %c0_i32_0, %c0_i32_1 : i32, i32, i32
  }
  func.func @transform_12(%arg0: i32) -> (i32, i32, i32) {
    %c0_i32 = arith.constant 0 : i32
    %c0_i32_0 = arith.constant 0 : i32
    %c0_i32_1 = arith.constant 0 : i32
    %c0_i32_2 = arith.constant 0 : i32
    return %c0_i32, %c0_i32_0, %c0_i32_1 : i32, i32, i32
  }
  func.func @transform_13(%arg0: i32) -> (i32, i32, i32) {
    %c0_i32 = arith.constant 0 : i32
    %c0_i32_0 = arith.constant 0 : i32
    %c0_i32_1 = arith.constant 0 : i32
    %c0_i32_2 = arith.constant 0 : i32
    return %c0_i32, %c0_i32_0, %c0_i32_1 : i32, i32, i32
  }
  func.func @transform_14(%arg0: i32) -> (i32, i32, i32) {
    %c0_i32 = arith.constant 0 : i32
    %c0_i32_0 = arith.constant 0 : i32
    %c0_i32_1 = arith.constant 0 : i32
    %c0_i32_2 = arith.constant 0 : i32
    return %c0_i32, %c0_i32_0, %c0_i32_1 : i32, i32, i32
  }
  func.func @transform_15(%arg0: i32) -> (i32, i32) {
    %c0_i32 = arith.constant 0 : i32
    %c0_i32_0 = arith.constant 0 : i32
    return %arg0, %c0_i32 : i32, i32
  }
  func.func @transform_16(%arg0: i32) -> (i32, i32) {
    %c0_i32 = arith.constant 0 : i32
    %c0_i32_0 = arith.constant 0 : i32
    return %arg0, %c0_i32 : i32, i32
  }
}

</mosaic_0001>

<bundles_post_ra>
// kernel: tpu_custom_call.1
= control target key start
LH: loop header
LB: loop body
LE: loop exit
PB: predicated region body
PF: predicated region fallthrough
CT: control target
= control target key end

     0   :  { %s2696_s21 = smov 0   ;;  %s3435_s0 = inlined_call_operand.vmem [shape: s32[16,1], index: 0, kind: input, shape index: {}]   ;;  %s3436_s1 = inlined_call_operand.vmem [shape: s32[64,1], index: 1, kind: input, shape index: {}]   ;;  %s3437_s2 = inlined_call_operand.vmem [shape: s32[16,1], index: 2, kind: input, shape index: {}]   ;;  %s3438_s3 = inlined_call_operand.vmem [shape: f32[16,1], index: 3, kind: input, shape index: {}]   ;;  %s3439_s4 = inlined_call_operand.vmem [shape: f32[32,32], index: 4, kind: input, shape index: {}]   ;;  %s3440_s5 = inlined_call_operand.vmem [shape: f32[64,32], index: 5, kind: input, shape index: {}]   ;;  %s3441_s6 = inlined_call_operand.vmem [shape: f32[16,32], index: 6, kind: input, shape index: {}]   ;;  %s3442_s7 = inlined_call_operand.vmem [shape: f32[32,32], index: 7, kind: input, shape index: {}]   ;;  %s3443_s8 = inlined_call_operand.vmem [shape: f32[1,32], index: 8, kind: input, shape index: {}]   ;;  %s3444_s9 = inlined_call_operand.vmem [shape: s32[128,1], index: 9, kind: input, shape index: {}]   ;;  %s3445_s10 = inlined_call_operand.vmem [shape: s32[64,1], index: 10, kind: input, shape index: {}]   ;;  %s3446_s11 = inlined_call_operand.vmem [shape: bf16[4,32,32], index: 11, kind: input, shape index: {}]   ;;  %s3447_s12 = inlined_call_operand.vmem [shape: bf16[4,32,32], index: 12, kind: input, shape index: {}]   ;;  %s3448_s13 = inlined_call_operand.vmem [shape: bf16[4,32,32], index: 13, kind: input, shape index: {}]   ;;  %s3449_s14 = inlined_call_operand.vmem [shape: f32[4,1,32], index: 14, kind: input, shape index: {}]   ;;  %s3450_s15 = inlined_call_operand.vmem [shape: f32[16,1], index: 15, kind: output, shape index: {0}]   ;;  %s3451_s16 = inlined_call_operand.vmem [shape: f32[16,1], index: 16, kind: output, shape index: {1}]  }
   0x1   :  { %3452 = sst [smem:[#allocation2_spill]] %s3435_s0 }
   0x2 LB: > { %s2702_s22 = sadd.s32 4294967295, %s2607_s21   ;;  %p2229_p0 = scmp.ge.s32.totalorder %s2607_s21, 1  ;;  %s2607_s21 = sphi %s2696_s21, %s27_s21  }
   0x3   : > { %p515_p1 = scmp.lt.s32.totalorder %s2607_s21, 3 }
   0x5   : > { %p516_p2 = pnand %p2229_p0, %p515_p1 }
   0x6   : > { %s2235_s23 = sshll.u32 (!%p516_p2), %s2702_s22, 3  ;;  %s2231_s28 = sshll.u32 (!%p516_p2), %s2702_s22, 2 }
   0x7   : > { %519 = sbr.rel (%p516_p2) target bundleno = 1217 (0x4c1), region = 80  ;;  %p609_p3 = scmp.lt.s32.totalorder (!%p516_p2), %s2235_s23, 15 }
   0x8   : > { %p595_p4 = scmp.lt.s32.totalorder (!%p516_p2), %s2231_s28, 7  ;;  %p590_p5 = scmp.lt.s32.totalorder (!%p516_p2), %s2702_s22, 1 }
   0x9   : > { %s3453_s17 = sld [smem:[#allocation2_spill]] (!%p516_p2) }
   0xc   : > { %v2609_v0 = vmov 0   ;;  %s3483_s23 = smov (!%p609_p3, %s2235_s23), 15  ;;  %s3485_s28 = smov (!%p595_p4, %s2231_s28), 7  ;;  %v2714_v7 = vld [vmem:[%s3440_s5 + $0x38] sm:$0xff]  ;;  %v2719_v8 = vld [vmem:[%s3440_s5 + $0x30] sm:$0xff]  ;;  %v2725_v9 = vld [vmem:[%s3440_s5 + $0x28] sm:$0xff]  ;;  %v644_v33 = vlaneseq }
   0xd   : > { %2474 = vset.pattern.permute.xlu1 %v2609_v0  ;;  %2473 = vset.pattern.permute.xlu0 %v2609_v0  ;;  %s2236_s24 = sshll.u32 %s3483_s23, 3  ;;  %s2232_s18 = sshll.u32 %s3485_s28, 3  ;;  %v2750_v22 = vld [vmem:[%s3440_s5 + $0x20] sm:$0xff]  ;;  %v2755_v23 = vld [vmem:[%s3440_s5 + $0x18] sm:$0xff]  ;;  %v2761_v24 = vld [vmem:[%s3440_s5 + $0x10] sm:$0xff]  ;;  %vm652_vm0 = vcmask 261120  }
   0xe   : > { %2475 = vset.pattern.permute.xlu2 %v2609_v0  ;;  %s612_s27 = scalar_lea.vmem %s3444_s9, %s2236_s24  ;;  %851 = vmatpush.msra.mxu2 %v2714_v7  ;;  %s598_s25 = scalar_lea.vmem %s3436_s1, %s2232_s18  ;;  %v2767_v25 = vld [vmem:[%s3440_s5 + $0x8] sm:$0xff]  ;;  %v2774_v26 = vld [vmem:[%s3440_s5] sm:$0xff]  ;;  %v632_v28 = vld [vmem:[%s3439_s4 + $0x18] sm:$0xff]  ;;  %v2790_v34 = vand.u32 127, %v644_v33  ;;  %v2610_v36 = vmov 0.0   ;;  %vm818_vm2 = vcmask 523264  }
   0xf   : > { %v764_v1 = vld [vmem:[%s612_s27 + $0x10] sm:$0xff]  ;;  %v762_v2 = vld [vmem:[%s612_s27] sm:$0xff]  ;;  %v765_v4 = vld [vmem:[%s612_s27 + $0x18] sm:$0xff]  ;;  %s3487_s22 = smov (!%p590_p5, %s2702_s22), 1  ;;  %728 = vmatpush.msra.mxu1 %v632_v28  ;;  %668 = vmatpush.msra.mxu0 %v632_v28  ;;  %vm912_vm11 = vcmask 130048  }
  0x10   : > { %777 = vperm.xlu1 %2474, %v764_v1   ;;  %771 = vperm.xlu0 %2473, %v762_v2   ;;  %v766_v3 = vld [vmem:[%s612_s27 + $0x20] sm:$0xff]  ;;  %v763_v5 = vld [vmem:[%s612_s27 + $0x8] sm:$0xff]  ;;  %v769_v10 = vld [vmem:[%s612_s27 + $0x38] sm:$0xff]  ;;  %s2737_s29 = sshll.u32 %s3487_s22, 3 }
  0x11   : > { %783 = vperm.xlu2 %2475, %v766_v3   ;;  %v767_v6 = vld [vmem:[%s612_s27 + $0x28] sm:$0xff]  ;;  %852 = vmatpush.msra.mxu2 %v2719_v8  ;;  %v768_v11 = vld [vmem:[%s612_s27 + $0x30] sm:$0xff]  ;;  %v676_v12 = vld [vmem:[%s598_s25] sm:$0xff]  ;;  %s618_s27 = scalar_lea.vmem %s3445_s10, %s2232_s18  ;;  %s593_s19 = scalar_lea.vmem %s3453_s17, %s2737_s29 }
  0x12   : > { %v678_v13 = vld [vmem:[%s598_s25 + $0x10] sm:$0xff]  ;;  %v677_v14 = vld [vmem:[%s598_s25 + $0x8] sm:$0xff]  ;;  %v679_v15 = vld [vmem:[%s598_s25 + $0x18] sm:$0xff]  ;;  %s603_s24 = scalar_lea.vmem %s3437_s2, %s2737_s29  ;;  %s627_s25 = scalar_lea.vmem %s3451_s16, %s2737_s29 }
  0x13   : > { %853 = vmatpush.msra.mxu2 %v2725_v9  ;;  %v885_v16 = vld [vmem:[%s618_s27 + $0x8] sm:$0xff]  ;;  %v884_v17 = vld [vmem:[%s618_s27] sm:$0xff]  ;;  %v886_v18 = vld [vmem:[%s618_s27 + $0x10] sm:$0xff]  ;;  %s623_s30 = scalar_lea.vmem %s3450_s15, %s2737_s29 }
  0x14   : > { %v887_v19 = vld [vmem:[%s618_s27 + $0x18] sm:$0xff]  ;;  %v643_v20 = vld [vmem:[%s593_s19] sm:$0xff]  ;;  %v631_v29 = vld [vmem:[%s3439_s4 + $0x10] sm:$0xff] }
  0x15   : > { %v745_v21 = vld [vmem:[%s603_s24] sm:$0xff]  ;;  %854 = vmatpush.msra.mxu2 %v2750_v22  ;;  %v630_v30 = vld [vmem:[%s3439_s4 + $0x8] sm:$0xff]  ;;  %729 = vmatpush.msra.mxu1 %v631_v29  ;;  %s607_s24 = scalar_lea.vmem %s3438_s3, %s2737_s29 }
  0x16   : > { %669 = vmatpush.msra.mxu0 %v631_v29  ;;  %v629_v32 = vld [vmem:[%s3439_s4] sm:$0xff]  ;;  %v642_v38 = vld [vmem:[%s3441_s6 + $0x8] sm:$0xff] }
  0x17   : > { %855 = vmatpush.msra.mxu2 %v2755_v23  ;;  %730 = vmatpush.msra.mxu1 %v630_v30  ;;  %v641_v41 = vld [vmem:[%s3441_s6] sm:$0xff] }
  0x18   : > { %780 = vperm.xlu1 %2474, %v765_v4   ;;  %774 = vperm.xlu0 %2473, %v763_v5  }
  0x19   : > { %786 = vperm.xlu2 %2475, %v767_v6   ;;  %856 = vmatpush.msra.mxu2 %v2761_v24  ;;  %v2448_v6 = vld [vmem:[%s3447_s12 + $0x8] sm:$0xff] }
  0x1a   : > { %670 = vmatpush.msra.mxu0 %v630_v30  ;;  %731 = vmatpush.msra.mxu1 %v629_v32 }
  0x1b   : > { %857 = vmatpush.msra.mxu2 %v2767_v25  ;;  %939 = vmatpush.msra.mxu3 %v642_v38 }
  0x1c   : > { %671 = vmatpush.msra.mxu0 %v629_v32 }
  0x1d   : > { %858 = vmatpush.msra.mxu2 %v2774_v26  ;;  %940 = vmatpush.msra.mxu3 %v641_v41 }
  0x1e   : > { %1044 = vmatpush.bf16.msrb.mxu0 %v2448_v6 }
  0x20   : > { %792 = vperm.xlu1 %2474, %v769_v10   ;;  %789 = vperm.xlu0 %2473, %v768_v11   ;;  %v2450_v10 = vld [vmem:[%s3447_s12 + $0x18] sm:$0xff]  ;;  %v2452_v11 = vld [vmem:[%s3447_s12 + $0x28] sm:$0xff] }
  0x21   : > { %681 = vperm.xlu2 %2475, %v676_v12   ;;  %1149 = vmatpush.bf16.msrb.mxu1 %v2450_v10  ;;  %v2447_v12 = vld [vmem:[%s3447_s12] sm:$0xff] }
  0x22   : > { %1230 = vmatpush.bf16.msrb.mxu2 %v2452_v11  ;;  %1045 = vmatpush.bf16.msrb.mxu0 %v2447_v12  ;;  %v2476_v12 = vld [vmem:[%s3449_s14] ss:$0 sm:$0xff] }
  0x28   : > { %687 = vperm.xlu1 %2474, %v678_v13   ;;  %684 = vperm.xlu0 %2473, %v677_v14   ;;  %v2449_v13 = vld [vmem:[%s3447_s12 + $0x10] sm:$0xff]  ;;  %v2451_v14 = vld [vmem:[%s3447_s12 + $0x20] sm:$0xff] }
  0x29   : > { %690 = vperm.xlu2 %2475, %v679_v15   ;;  %1150 = vmatpush.bf16.msrb.mxu1 %v2449_v13  ;;  %v2440_v15 = vld [vmem:[%s3446_s11 + $0x8] sm:$0xff] }
  0x2a   : > { %1231 = vmatpush.bf16.msrb.mxu2 %v2451_v14  ;;  %1097 = vmatpush.bf16.msrb.mxu3 %v2440_v15 }
  0x30   : > { %892 = vperm.xlu1 %2474, %v885_v16   ;;  %889 = vperm.xlu0 %2473, %v884_v17   ;;  %v2439_v16 = vld [vmem:[%s3446_s11] sm:$0xff] }
  0x31   : > { %895 = vperm.xlu2 %2475, %v886_v18   ;;  %1098 = vmatpush.bf16.msrb.mxu3 %v2439_v16  ;;  %v2442_v18 = vld [vmem:[%s3446_s11 + $0x18] sm:$0xff] }
  0x38   : > { %898 = vperm.xlu0 %2473, %v887_v19   ;;  %647 = vperm.xlu1 %2474, %v643_v20  }
  0x39   : > { %747 = vperm.xlu2 %2475, %v745_v21  }
  0x6b   : > { %v784_v27 = vpop.permute.xlu2 %783 }
  0x6c   : > { %vm798_vm8 = vcmp.eq.s32.totalorder %v2790_v34, %v784_v27 }
  0x6d   : > { %v2257_v53 = vsel %vm798_vm8, 1.0, %v2610_v36 }
  0x73   : > { %v787_v31 = vpop.permute.xlu2 %786 }
  0x74   : > { %vm799_vm13 = vcmp.eq.s32.totalorder %v2790_v34, %v787_v31 }
  0x75   : > { %v2258_v62 = vsel %vm799_vm13, 1.0, %v2610_v36 }
  0x7b   : > { %v682_v35 = vpop.permute.xlu2 %681 }
  0x7c   : > { %vm692_vm1 = vcmp.eq.s32.totalorder %v2790_v34, %v682_v35  ;;  %v2441_v35 = vld [vmem:[%s3446_s11 + $0x10] sm:$0xff] }
  0x7d   : > { %v2243_v37 = vsel %vm692_vm1, 1.0, %v2610_v36 }
  0x7e   : > { %2247 = vmatmul.msk.f32.vlgmr.msra.gmra.mxu1 %vm652_vm0, %v2243_v37  ;;  %v2454_v37 = vld [vmem:[%s3447_s12 + $0x38] sm:$0xff] }
  0x7f   : > { %1323 = vmatpush.bf16.msra.mxu1 %v2454_v37 }
  0x82   : > { %v778_v39 = vpop.permute.xlu1 %777  ;;  %v772_v40 = vpop.permute.xlu0 %771 }
  0x83   : > { %vm794_vm3 = vcmp.eq.s32.totalorder %v2790_v34, %v772_v40  ;;  %vm796_vm5 = vcmp.eq.s32.totalorder %v2790_v34, %v778_v39  ;;  %v691_v58 = vpop.permute.xlu2 %690 }
  0x84   : > { %v2253_v42 = vsel %vm794_vm3, 1.0, %v2610_v36  ;;  %v2255_v46 = vsel %vm796_vm5, 1.0, %v2610_v36  ;;  %vm695_vm12 = vcmp.eq.s32.totalorder %v2790_v34, %v691_v58 }
  0x85   : > { %2261 = vmatmul.msk.f32.vlgmr.msra.gmra.mxu2 %vm818_vm2, %v2253_v42  ;;  %v2246_v60 = vsel %vm695_vm12, 1.0, %v2610_v36  ;;  %v2453_v42 = vld [vmem:[%s3447_s12 + $0x30] sm:$0xff] }
  0x86   : > { %1324 = vmatpush.bf16.msra.mxu1 %v2453_v42 }
  0x8a   : > { %v781_v43 = vpop.permute.xlu1 %780  ;;  %v775_v44 = vpop.permute.xlu0 %774 }
  0x8b   : > { %vm795_vm4 = vcmp.eq.s32.totalorder %v2790_v34, %v775_v44  ;;  %vm797_vm6 = vcmp.eq.s32.totalorder %v2790_v34, %v781_v43  ;;  %v896_v0 = vpop.permute.xlu2 %895 }
  0x8c   : > { %v2254_v45 = vsel %vm795_vm4, 1.0, %v2610_v36  ;;  %v2256_v51 = vsel %vm797_vm6, 1.0, %v2610_v36  ;;  %vm902_vm3 = vcmp.eq.s32.totalorder %v2790_v34, %v896_v0 }
  0x8d   : > { %2262 = vmatmul.msk.f32.gmra.mxu2 %vm818_vm2, %v2254_v45  ;;  %v2271_v2 = vsel %vm902_vm3, 1.0, %v2610_v36 }
  0x92   : > { %v793_v47 = vpop.permute.xlu1 %792  ;;  %v790_v48 = vpop.permute.xlu0 %789 }
  0x93   : > { %vm800_vm1 = vcmp.eq.s32.totalorder %v2790_v34, %v790_v48  ;;  %vm801_vm4 = vcmp.eq.s32.totalorder %v2790_v34, %v793_v47  ;;  %v2443_v47 = vld [vmem:[%s3446_s11 + $0x20] sm:$0xff] }
  0x94   : > { %v2259_v1 = vsel %vm800_vm1, 1.0, %v2610_v36  ;;  %v2260_v4 = vsel %vm801_vm4, 1.0, %v2610_v36 }
  0x95   : > { %2263 = vmatmul.msk.f32.gmra.mxu2 %vm818_vm2, %v2255_v46  ;;  %v2444_v46 = vld [vmem:[%s3446_s11 + $0x28] sm:$0xff] }
  0x9a   : > { %v688_v49 = vpop.permute.xlu1 %687  ;;  %v685_v50 = vpop.permute.xlu0 %684 }
  0x9b   : > { %vm693_vm7 = vcmp.eq.s32.totalorder %v2790_v34, %v685_v50  ;;  %vm694_vm9 = vcmp.eq.s32.totalorder %v2790_v34, %v688_v49 }
  0x9c   : > { %v2244_v52 = vsel %vm693_vm7, 1.0, %v2610_v36  ;;  %v2245_v56 = vsel %vm694_vm9, 1.0, %v2610_v36 }
  0x9d   : > { %2248 = vmatmul.msk.f32.gmra.mxu1 %vm652_vm0, %v2244_v52  ;;  %2264 = vmatmul.msk.f32.gmra.mxu2 %vm818_vm2, %v2256_v51 }
  0xa2   : > { %v893_v54 = vpop.permute.xlu1 %892  ;;  %v890_v55 = vpop.permute.xlu0 %889 }
  0xa3   : > { %vm900_vm10 = vcmp.eq.s32.totalorder %v2790_v34, %v890_v55  ;;  %vm901_vm14 = vcmp.eq.s32.totalorder %v2790_v34, %v893_v54 }
  0xa4   : > { %v2269_v57 = vsel %vm900_vm10, 1.0, %v2610_v36  ;;  %v2270_v63 = vsel %vm901_vm14, 1.0, %v2610_v36 }
  0xa5   : > { %2249 = vmatmul.msk.f32.gmra.mxu1 %vm652_vm0, %v2245_v56  ;;  %2265 = vmatmul.msk.f32.gmra.mxu2 %vm818_vm2, %v2257_v53  ;;  %v2446_v53 = vld [vmem:[%s3446_s11 + $0x38] sm:$0xff]  ;;  %v2445_v56 = vld [vmem:[%s3446_s11 + $0x30] sm:$0xff] }
  0xa6   : > { %2273 = vmatmul.msk.f32.vlgmr.msra.gmra.mxu3 %vm912_vm11, %v2269_v57 }
  0xa7   : > { %1271 = vmatpush.bf16.msra.mxu3 %v2444_v46 }
  0xaa   : > { %v648_v59 = vpop.permute.xlu1 %647  ;;  %v899_v3 = vpop.permute.xlu0 %898 }
  0xab   : > { %vm649_vm15 = vcmp.eq.s32.totalorder %v2790_v34, %v648_v59  ;;  %vm903_vm5 = vcmp.eq.s32.totalorder %v2790_v34, %v899_v3  ;;  %1272 = vmatpush.bf16.msra.mxu3 %v2443_v47 }
  0xac   : > { %v2241_v61 = vsel %vm649_vm15, 1.0, %v2610_v36  ;;  %v2272_v5 = vsel %vm903_vm5, 1.0, %v2610_v36 }
  0xad   : > { %2242 = vmatmul.msk.f32.vlgmr.msra.gmra.mxu0 %vm652_vm0, %v2241_v61  ;;  %2250 = vmatmul.msk.f32.gmra.mxu1 %vm652_vm0, %v2246_v60 }
  0xae   : > { %2266 = vmatmul.msk.f32.gmra.mxu2 %vm818_vm2, %v2258_v62  ;;  %2274 = vmatmul.msk.f32.gmra.mxu3 %vm912_vm11, %v2270_v63 }
  0xaf   : > { %1186 = vmatpush.bf16.msra.mxu0 %v2442_v18 }
  0xb3   : > { %1187 = vmatpush.bf16.msra.mxu0 %v2441_v35 }
  0xb6   : > { %2267 = vmatmul.msk.f32.gmra.mxu2 %vm818_vm2, %v2259_v1  ;;  %2275 = vmatmul.msk.f32.gmra.mxu3 %vm912_vm11, %v2271_v2 }
  0xbe   : > { %2268 = vmatmul.msk.f32.gmra.mxu2 %vm818_vm2, %v2260_v4  ;;  %2276 = vmatmul.msk.f32.gmra.mxu3 %vm912_vm11, %v2272_v5 }
  0xfb   : > { %v733_v20 = vpop.f32.mrf.mxu1 }
 0x108   : > { %v860_v17 = vpop.f32.mrf.mxu2 }
 0x110   : > { %v863_v19 = vpop.f32.mrf.mxu2 }
 0x111   : > { %v958_v21 = vpack.c.bf16 %v863_v19, %v860_v17 }
 0x113   : > { %2285 = vmatmul.msk.bf16.vlgmr.msrb.gmra.mxu0 %vm652_vm0, %v958_v21  ;;  %2309 = vmatmul.msk.bf16.vlgmr.msrb.gmra.mxu1 %vm652_vm0, %v958_v21 }
 0x114   : > { %2333 = vmatmul.msk.bf16.vlgmr.msrb.gmra.mxu2 %vm652_vm0, %v958_v21  ;;  %1364 = vmatpush.bf16.msrb.mxu0 %v2446_v53 }
 0x118   : > { %v866_v27 = vpop.f32.mrf.mxu2  ;;  %1365 = vmatpush.bf16.msrb.mxu0 %v2445_v56 }
 0x11a   : > { %v736_v28 = vpop.f32.mrf.mxu1 }
 0x11b   : > { %v954_v29 = vpack.c.bf16 %v736_v28, %v733_v20 }
 0x11d   : > { %2297 = vmatmul.msk.bf16.vlgmr.msrb.gmra.mxu3 %vm652_vm0, %v954_v29 }
 0x120   : > { %v869_v30 = vpop.f32.mrf.mxu2 }
 0x121   : > { %v959_v31 = vpack.c.bf16 %v869_v30, %v866_v27 }
 0x122   : > { %v739_v32 = vpop.f32.mrf.mxu1 }
 0x123   : > { %2286 = vmatmul.msk.bf16.gmra.mxu0 %vm652_vm0, %v959_v31  ;;  %2310 = vmatmul.msk.bf16.gmra.mxu1 %vm652_vm0, %v959_v31 }
 0x124   : > { %2334 = vmatmul.msk.bf16.gmra.mxu2 %vm652_vm0, %v959_v31 }
 0x128   : > { %v872_v38 = vpop.f32.mrf.mxu2 }
 0x129   : > { %v942_v39 = vpop.f32.mrf.mxu3 }
 0x12a   : > { %v742_v40 = vpop.f32.mrf.mxu1  ;;  %v2924_v57 = vpop.f32.mrf.mxu0 }
 0x12b   : > { %v955_v41 = vpack.c.bf16 %v742_v40, %v739_v32 }
 0x12d   : > { %2298 = vmatmul.msk.bf16.gmra.mxu3 %vm652_vm0, %v955_v41 }
 0x131   : > { %v875_v43 = vpop.f32.mrf.mxu2  ;;  %v945_v45 = vpop.f32.mrf.mxu3 }
 0x132   : > { %v960_v44 = vpack.c.bf16 %v875_v43, %v872_v38  ;;  %v956_v49 = vpack.c.bf16 %v945_v45, %v942_v39 }
 0x134   : > { %2287 = vmatmul.msk.bf16.gmra.mxu0 %vm652_vm0, %v960_v44  ;;  %2311 = vmatmul.msk.bf16.gmra.mxu1 %vm652_vm0, %v960_v44 }
 0x135   : > { %2335 = vmatmul.msk.bf16.gmra.mxu2 %vm652_vm0, %v960_v44 }
 0x139   : > { %v878_v48 = vpop.f32.mrf.mxu2  ;;  %v948_v50 = vpop.f32.mrf.mxu3 }
 0x13d   : > { %2299 = vmatmul.msk.bf16.gmra.mxu3 %vm652_vm0, %v956_v49 }
 0x141   : > { %v881_v51 = vpop.f32.mrf.mxu2  ;;  %v951_v54 = vpop.f32.mrf.mxu3 }
 0x142   : > { %v961_v52 = vpack.c.bf16 %v881_v51, %v878_v48  ;;  %v957_v55 = vpack.c.bf16 %v951_v54, %v948_v50 }
 0x144   : > { %2288 = vmatmul.msk.bf16.gmra.mxu0 %vm652_vm0, %v961_v52  ;;  %2312 = vmatmul.msk.bf16.gmra.mxu1 %vm652_vm0, %v961_v52 }
 0x145   : > { %2336 = vmatmul.msk.bf16.gmra.mxu2 %vm652_vm0, %v961_v52 }
 0x14d   : > { %2300 = vmatmul.msk.bf16.gmra.mxu3 %vm652_vm0, %v957_v55 }
 0x154   : > { %2321 = vmatmul.msk.bf16.vlgmr.msra.gmra.mxu0 %vm652_vm0, %v954_v29  ;;  %2357 = vmatmul.msk.bf16.vlgmr.msra.gmra.mxu1 %vm652_vm0, %v958_v21 }
 0x15d   : > { %2345 = vmatmul.msk.bf16.vlgmr.msra.gmra.mxu3 %vm652_vm0, %v954_v29 }
 0x164   : > { %2322 = vmatmul.msk.bf16.gmra.mxu0 %vm652_vm0, %v955_v41  ;;  %2358 = vmatmul.msk.bf16.gmra.mxu1 %vm652_vm0, %v959_v31 }
 0x16d   : > { %2346 = vmatmul.msk.bf16.gmra.mxu3 %vm652_vm0, %v955_v41 }
 0x174   : > { %2323 = vmatmul.msk.bf16.gmra.mxu0 %vm652_vm0, %v956_v49  ;;  %2359 = vmatmul.msk.bf16.gmra.mxu1 %vm652_vm0, %v960_v44 }
 0x17d   : > { %2347 = vmatmul.msk.bf16.gmra.mxu3 %vm652_vm0, %v956_v49 }
 0x184   : > { %2324 = vmatmul.msk.bf16.gmra.mxu0 %vm652_vm0, %v957_v55  ;;  %2360 = vmatmul.msk.bf16.gmra.mxu1 %vm652_vm0, %v961_v52 }
 0x18d   : > { %2348 = vmatmul.msk.bf16.gmra.mxu3 %vm652_vm0, %v957_v55 }
 0x190   : > { %v1047_v58 = vpop.f32.mrf.mxu0  ;;  %v1152_v59 = vpop.f32.mrf.mxu1 }
 0x194   : > { %2369 = vmatmul.msk.bf16.vlgmr.msrb.gmra.mxu0 %vm652_vm0, %v954_v29 }
 0x197   : > { %v2940_v28 = vpop.f32.mrf.mxu2 }
 0x198   : > { %v1049_v60 = vpop.f32.mrf.mxu0  ;;  %v1153_v61 = vpop.f32.mrf.mxu1 }
 0x19f   : > { %v2946_v37 = vpop.f32.mrf.mxu2 }
 0x1a0   : > { %v2928_v62 = vpop.f32.mrf.mxu0  ;;  %v1100_v63 = vpop.f32.mrf.mxu3 }
 0x1a1   : > { %v1155_v0 = vpop.f32.mrf.mxu1 }
 0x1a4   : > { %2370 = vmatmul.msk.bf16.gmra.mxu0 %vm652_vm0, %v955_v41 }
 0x1a7   : > { %v2950_v41 = vpop.f32.mrf.mxu2 }
 0x1a8   : > { %v1054_v1 = vpop.f32.mrf.mxu0  ;;  %v1102_v2 = vpop.f32.mrf.mxu3 }
 0x1a9   : > { %v1156_v3 = vpop.f32.mrf.mxu1  ;;  %v1103_v51 = vadd.f32 %v1102_v2, %v1049_v60 }
 0x1ab   : > { %v1124_v59 = vadd.f32 %v2476_v12, %v1103_v51 }
 0x1ad   : > { %v2374_v0 = vmul.f32 -1.442695, %v1124_v59  ;;  %v2458_v59 = vld [vmem:[%s3448_s13 + $0x18] sm:$0xff] }
 0x1ae   : > { %1627 = vmatpush.bf16.msrb.mxu3 %v2458_v59 }
 0x1af   : > { %v2954_v45 = vpop.f32.mrf.mxu2 }
 0x1b0   : > { %v1105_v4 = vpop.f32.mrf.mxu3 }
 0x1b1   : > { %v1057_v5 = vpop.f32.mrf.mxu0  ;;  %v1158_v40 = vpop.f32.mrf.mxu1 }
 0x1b4   : > { %2371 = vmatmul.msk.bf16.gmra.mxu0 %vm652_vm0, %v956_v49  ;;  %v1101_v49 = vadd.f32 %v1100_v63, %v1047_v58 }
 0x1b6   : > { %v1123_v53 = vadd.f32 %v2476_v12, %v1101_v49 }
 0x1b8   : > { %v1107_v6 = vpop.f32.mrf.mxu3  ;;  %v2373_v61 = vmul.f32 -1.442695, %v1123_v53 }
 0x1b9   : > { %v1059_v10 = vpop.f32.mrf.mxu0  ;;  %v1160_v44 = vpop.f32.mrf.mxu1 }
 0x1ba   : > { %2481 = vpow2.f32 %v2373_v61  ;;  %v2460_v61 = vld [vmem:[%s3448_s13 + $0x28] sm:$0xff] }
 0x1bb   : > { %2483 = vpow2.f32 %v2374_v0  ;;  %1662 = vmatpush.bf16.msrb.mxu1 %v2460_v61 }
 0x1c0   : > { %v1110_v11 = vpop.f32.mrf.mxu3 }
 0x1c1   : > { %v1062_v13 = vpop.f32.mrf.mxu0  ;;  %v1111_v14 = vadd.f32 %v1110_v11, %v1057_v5  ;;  %v1163_v50 = vpop.f32.mrf.mxu1  ;;  %v1106_v11 = vadd.f32 %v1105_v4, %v2928_v62  ;;  %v2456_v62 = vld [vmem:[%s3448_s13 + $0x8] sm:$0xff] }
 0x1c2   : > { %1592 = vmatpush.bf16.msra.mxu2 %v2456_v62 }
 0x1c3   : > { %v2935_v15 = vadd.f32 %v2476_v12, %v1111_v14  ;;  %v1108_v14 = vadd.f32 %v1107_v6, %v1054_v1 }
 0x1c4   : > { %2372 = vmatmul.msk.bf16.gmra.mxu0 %vm652_vm0, %v957_v55  ;;  %v1243_v55 = vpop.f32.mrf.mxu2 }
 0x1c8   : > { %v1112_v16 = vpop.f32.mrf.mxu3 }
 0x1c9   : > { %v1064_v17 = vpop.f32.mrf.mxu0  ;;  %v1113_v18 = vadd.f32 %v1112_v16, %v1059_v10  ;;  %v1165_v5 = vpop.f32.mrf.mxu1  ;;  %v2967_v10 = vld [vmem:[%s3449_s14 + $0x2] ss:$0 sm:$0xff] }
 0x1ca   : > { %v2482_v16 = vpop.eup %2481 }
 0x1cb   : > { %v2938_v19 = vadd.f32 %v2476_v12, %v1113_v18 }
 0x1d0   : > { %v1115_v20 = vpop.f32.mrf.mxu3 }
 0x1d1   : > { %v1116_v21 = vadd.f32 %v1115_v20, %v1062_v13  ;;  %v1189_v27 = vpop.f32.mrf.mxu0  ;;  %v1245_v13 = vpop.f32.mrf.mxu2 }
 0x1d2   : > { %v2484_v27 = vpop.eup %2483 }
 0x1d3   : > { %v2942_v29 = vadd.f32 %v2476_v12, %v1116_v21  ;;  %v2985_v1 = vadd.f32 1.0, %v2484_v27 }
 0x1d5   : > { %vm1434_vm11 = vweird.f32 %v2985_v1 }
 0x1d8   : > { %v1117_v30 = vpop.f32.mrf.mxu3 }
 0x1d9   : > { %v1118_v31 = vadd.f32 %v1117_v30, %v1064_v17  ;;  %v1190_v32 = vpop.f32.mrf.mxu0  ;;  %v1125_v17 = vadd.f32 %v2476_v12, %v1106_v11  ;;  %v2975_v30 = vadd.f32 1.0, %v2482_v16  ;;  %v2988_v6 = vpop.f32.mrf.mxu2 }
 0x1db   : > { %v2944_v35 = vadd.f32 %v2476_v12, %v1118_v31  ;;  %v1126_v31 = vadd.f32 %v2476_v12, %v1108_v14  ;;  %2485 = vrcp.f32 %v2975_v30  ;;  %v1423_v59 = vand.u32 2147483647, %v2975_v30 }
 0x1dc   : > { %vm1419_vm7 = vweird.f32 %v2975_v30 }
 0x1dd   : > { %v2376_v4 = vmul.f32 -1.442695, %v1126_v31  ;;  %vm3061_vm9 = vcmp.eq.f32.partialorder %v1423_v59, 8.507059e+37 }
 0x1e0   : > { %v2948_v38 = vpop.f32.mrf.mxu3 }
 0x1e1   : > { %v1192_v39 = vpop.f32.mrf.mxu0  ;;  %v1275_v16 = vadd.f32 %v2948_v38, %v2940_v28 }
 0x1e2   : > { %v1326_v39 = vpop.f32.mrf.mxu1 }
 0x1e3   : > { %v1297_v62 = vadd.f32 %v2967_v10, %v1275_v16 }
 0x1e8   : > { %v2952_v42 = vpop.f32.mrf.mxu3 }
 0x1e9   : > { %v1193_v43 = vpop.f32.mrf.mxu0 }
 0x1ea   : > { %v2375_v43 = vmul.f32 -1.442695, %v1125_v17  ;;  %v1328_v53 = vpop.f32.mrf.mxu1 }
 0x1ec   : > { %2487 = vpow2.f32 %v2375_v43 }
 0x1ed   : > { %2489 = vrcp.f32 %v2985_v1 }
 0x1ee   : > { %2491 = vpow2.f32 %v2376_v4  ;;  %v1277_v4 = vadd.f32 %v2952_v42, %v2946_v37 }
 0x1f0   : > { %v2956_v46 = vpop.f32.mrf.mxu3  ;;  %v1298_v37 = vadd.f32 %v2967_v10, %v1277_v4 }
 0x1f1   : > { %v1195_v47 = vpop.f32.mrf.mxu0 }
 0x1f2   : > { %v2958_v48 = vadd.f32 %v1195_v47, %v1158_v40 }
 0x1f8   : > { %v2960_v52 = vpop.f32.mrf.mxu3 }
 0x1f9   : > { %v1197_v54 = vpop.f32.mrf.mxu0 }
 0x1fa   : > { %v2962_v56 = vadd.f32 %v1197_v54, %v1160_v44  ;;  %v2995_v44 = vld [vmem:[%s3449_s14 + $0x3] ss:$0 sm:$0xff] }
 0x200   : > { %v1284_v3 = vpop.f32.mrf.mxu3 }
 0x201   : > { %v1200_v58 = vpop.f32.mrf.mxu0  ;;  %v1285_v60 = vadd.f32 %v1284_v3, %v1243_v55 }
 0x202   : > { %v2969_v63 = vadd.f32 %v1200_v58, %v1163_v50  ;;  %v2998_v50 = vpop.eup %2485  ;;  %v1250_v58 = vpop.f32.mrf.mxu2 }
 0x203   : > { %v2972_v2 = vadd.f32 %v2967_v10, %v1285_v60  ;;  %v2488_v54 = vpop.eup %2487  ;;  %v1415_v3 = vmul.f32 %v2998_v50, %v2975_v30  ;;  %vm1420_vm6 = vweird.f32 %v2998_v50 }
 0x204   : > { %v3007_v0 = vpop.eup %2489  ;;  %v3011_v14 = vadd.f32 1.0, %v2488_v54  ;;  %vm3057_vm8 = vmor %vm1419_vm7, %vm1420_vm6 }
 0x205   : > { %v1416_v27 = vsub.f32 1.0, %v1415_v3  ;;  %v1430_v31 = vmul.f32 %v3007_v0, %v2985_v1  ;;  %vm1435_vm10 = vweird.f32 %v3007_v0 }
 0x206   : > { %vm3088_vm12 = vmor %vm1434_vm11, %vm1435_vm10  ;;  %vm1449_vm14 = vweird.f32 %v3011_v14 }
 0x208   : > { %v1286_v18 = vpop.f32.mrf.mxu3 }
 0x209   : > { %v1202_v20 = vpop.f32.mrf.mxu0  ;;  %v1287_v21 = vadd.f32 %v1286_v18, %v1245_v13  ;;  %v2455_v18 = vld [vmem:[%s3448_s13] sm:$0xff] }
 0x20a   : > { %v2977_v32 = vadd.f32 %v1202_v20, %v1165_v5  ;;  %v2492_v5 = vpop.eup %2491  ;;  %v2457_v20 = vld [vmem:[%s3448_s13 + $0x10] sm:$0xff]  ;;  %1593 = vmatpush.bf16.msra.mxu2 %v2455_v18 }
 0x20b   : > { %v2980_v40 = vadd.f32 %v2967_v10, %v1287_v21  ;;  %v2459_v21 = vld [vmem:[%s3448_s13 + $0x20] sm:$0xff]  ;;  %1628 = vmatpush.bf16.msrb.mxu3 %v2457_v20 }
 0x20c   : > { %1663 = vmatpush.bf16.msrb.mxu1 %v2459_v21  ;;  %v1440_v21 = vand.u32 2147483648, %v2985_v1 }
 0x210   : > { %v2990_v12 = vpop.f32.mrf.mxu3  ;;  %2000 = vmatpush.msra.mxu1 %v2714_v7 }
 0x211   : > { %v1367_v47 = vpop.f32.mrf.mxu0 }
 0x212   : > { %v1368_v49 = vadd.f32 %v1367_v47, %v1326_v39  ;;  %v3026_v39 = vadd.f32 1.0, %v2492_v5  ;;  %2001 = vmatpush.msra.mxu1 %v2719_v8  ;;  %v1425_v8 = vand.u32 2147483648, %v2975_v30 }
 0x214   : > { %v1390_v51 = vadd.f32 %v2995_v44, %v1368_v49  ;;  %v1431_v49 = vsub.f32 1.0, %v1430_v31  ;;  %2002 = vmatpush.msra.mxu1 %v2725_v9  ;;  %v1426_v20 = vor.u32 1.1754944e-38, %v1425_v8  ;;  %v1455_v8 = vand.u32 2147483648, %v3011_v14 }
 0x216   : > { %v2377_v55 = vmul.f32 -1.442695, %v1390_v51  ;;  %v1417_v51 = vmul.f32 %v2998_v50, %v1416_v27  ;;  %v1432_v61 = vmul.f32 %v3007_v0, %v1431_v49  ;;  %2003 = vmatpush.msra.mxu1 %v2750_v22 }
 0x218   : > { %2493 = vpow2.f32 %v2377_v55  ;;  %v1291_v60 = vpop.f32.mrf.mxu3  ;;  %v1418_v42 = vadd.f32 %v2998_v50, %v1417_v51  ;;  %2004 = vmatpush.msra.mxu1 %v2755_v23  ;;  %v1433_v30 = vadd.f32 %v3007_v0, %v1432_v61 }
 0x219   : > { %v1292_v11 = vadd.f32 %v1291_v60, %v1250_v58  ;;  %v1369_v13 = vpop.f32.mrf.mxu0  ;;  %2495 = vrcp.f32 %v3011_v14 }
 0x21a   : > { %v1370_v17 = vadd.f32 %v1369_v13, %v1328_v53  ;;  %2497 = vrcp.f32 %v3026_v39  ;;  %v1331_v53 = vpop.f32.mrf.mxu1  ;;  %v1422_v22 = vsel %vm3057_vm8, %v2998_v50, %v1418_v42  ;;  %2005 = vmatpush.msra.mxu1 %v2761_v24  ;;  %v1438_v50 = vand.u32 2147483647, %v2985_v1 }
 0x21b   : > { %v3029_v28 = vadd.f32 %v2967_v10, %v1292_v11  ;;  %v1437_v49 = vsel %vm3088_vm12, %v3007_v0, %v1433_v30  ;;  %v1282_v0 = vadd.f32 %v2960_v52, %v2954_v45  ;;  %v2461_v30 = vld [vmem:[%s3448_s13 + $0x30] sm:$0xff]  ;;  %vm1464_vm12 = vweird.f32 %v3026_v39 }
 0x21c   : > { %v1391_v38 = vadd.f32 %v2995_v44, %v1370_v17  ;;  %2006 = vmatpush.msra.mxu1 %v2767_v25  ;;  %vm1439_vm13 = vcmp.eq.f32.partialorder %v1438_v50, 8.507059e+37  ;;  %v1280_v25 = vadd.f32 %v2956_v46, %v2950_v41  ;;  %v2462_v41 = vld [vmem:[%s3448_s13 + $0x38] sm:$0xff] }
 0x21d   : > { %1697 = vmatpush.bf16.msrb.mxu2 %v2462_v41 }
 0x21e   : > { %v2494_v43 = vpop.eup %2493  ;;  %v2378_v47 = vmul.f32 -1.442695, %v1391_v38  ;;  %2007 = vmatpush.msra.mxu1 %v2774_v26  ;;  %v1299_v52 = vadd.f32 %v2967_v10, %v1280_v25 }
 0x21f   : > { %v3039_v54 = vadd.f32 1.0, %v2494_v43  ;;  %v3049_v3 = vpop.eup %2495  ;;  %v1427_v43 = vsel %vm3061_vm9, %v1426_v20, %v1422_v22 }
 0x220   : > { %2499 = vpow2.f32 %v2378_v47  ;;  %v3054_v58 = vpop.eup %2497  ;;  %v1445_v23 = vmul.f32 %v3049_v3, %v3011_v14  ;;  %vm1450_vm3 = vweird.f32 %v3049_v3 }
 0x221   : > { %2501 = vrcp.f32 %v3039_v54  ;;  %v1372_v55 = vpop.f32.mrf.mxu0  ;;  %v1460_v1 = vmul.f32 %v3054_v58, %v3026_v39  ;;  %v1505_v22 = vand.u32 2147483648, %v3039_v54  ;;  %vm1499_vm1 = vweird.f32 %v3039_v54  ;;  %1698 = vmatpush.bf16.msrb.mxu2 %v2461_v30  ;;  %vm3156_vm11 = vmor %vm1449_vm14, %vm1450_vm3 }
 0x222   : > { %2503 = vtanh.f32 %v1297_v62  ;;  %v1373_v7 = vadd.f32 %v1372_v55, %v1331_v53  ;;  %v1333_v31 = vpop.f32.mrf.mxu1  ;;  %v1441_v53 = vor.u32 1.1754944e-38, %v1440_v21  ;;  %v1503_v21 = vand.u32 2147483647, %v3039_v54 }
 0x223   : > { %2505 = vtanh.f32 %v1298_v37  ;;  %v1446_v37 = vsub.f32 1.0, %v1445_v23  ;;  %v1461_v9 = vsub.f32 1.0, %v1460_v1  ;;  %vm1465_vm6 = vweird.f32 %v3054_v58 }
 0x224   : > { %v1392_v5 = vadd.f32 %v2995_v44, %v1373_v7  ;;  %v1453_v7 = vand.u32 2147483647, %v3011_v14  ;;  %v1442_v61 = vsel %vm1439_vm13, %v1441_v53, %v1437_v49  ;;  %vm1504_vm8 = vcmp.eq.f32.partialorder %v1503_v21, 8.507059e+37  ;;  %vm3167_vm13 = vmor %vm1464_vm12, %vm1465_vm6 }
 0x226   : > { %v2500_v60 = vpop.eup %2499  ;;  %v2379_v13 = vmul.f32 -1.442695, %v1392_v5  ;;  %vm1454_vm14 = vcmp.eq.f32.partialorder %v1453_v7, 8.507059e+37 }
 0x227   : > { %v3066_v16 = vpop.eup %2501  ;;  %v3073_v17 = vadd.f32 1.0, %v2500_v60 }
 0x228   : > { %v2504_v18 = vpop.eup %2503  ;;  %v1495_v27 = vmul.f32 %v3066_v16, %v3039_v54  ;;  %2507 = vpow2.f32 %v2379_v13  ;;  %vm1500_vm15 = vweird.f32 %v3066_v16  ;;  %v1447_v13 = vmul.f32 %v3049_v3, %v1446_v37 }
 0x229   : > { %2509 = vrcp.f32 %v3073_v17  ;;  %v1374_v38 = vpop.f32.mrf.mxu0  ;;  %v3095_v47 = vmul.f32 %v2504_v18, %v1427_v43  ;;  %v2506_v51 = vpop.eup %2505  ;;  %v1300_v18 = vadd.f32 %v2967_v10, %v1282_v0  ;;  %vm3136_vm4 = vmor %vm1499_vm1, %vm1500_vm15  ;;  %v1520_v50 = vand.u32 2147483648, %v3073_v17 }
 0x22a   : > { %v1496_v24 = vsub.f32 1.0, %v1495_v27  ;;  %v1375_v4 = vadd.f32 %v1374_v38, %v1333_v31  ;;  %v3110_v26 = vmul.f32 %v2506_v51, %v1442_v61  ;;  %v1462_v27 = vmul.f32 %v3054_v58, %v1461_v9 }
 0x22b   : > { %2511 = vtanh.f32 %v3095_v47  ;;  %v1518_v38 = vand.u32 2147483647, %v3073_v17  ;;  %v1448_v62 = vadd.f32 %v3049_v3, %v1447_v13  ;;  %vm1514_vm7 = vweird.f32 %v3073_v17 }
 0x22c   : > { %v1497_v55 = vmul.f32 %v3066_v16, %v1496_v24  ;;  %v1393_v59 = vadd.f32 %v2995_v44, %v1375_v4  ;;  %v1506_v24 = vor.u32 1.1754944e-38, %v1505_v22  ;;  %v1463_v51 = vadd.f32 %v3054_v58, %v1462_v27 }
 0x22d   : > { %vm1519_vm10 = vcmp.eq.f32.partialorder %v1518_v38, 8.507059e+37  ;;  %v1468_v61 = vand.u32 2147483647, %v3026_v39 }
 0x22e   : > { %v2508_v42 = vpop.eup %2507  ;;  %v2380_v5 = vmul.f32 -1.442695, %v1393_v59  ;;  %v1498_v45 = vadd.f32 %v3066_v16, %v1497_v55  ;;  %v1470_v59 = vand.u32 2147483648, %v3026_v39  ;;  %v1467_v39 = vsel %vm3167_vm13, %v3054_v58, %v1463_v51 }
 0x22f   : > { %v2510_v60 = vpop.eup %2509  ;;  %v3112_v11 = vadd.f32 1.0, %v2508_v42  ;;  %vm1469_vm15 = vcmp.eq.f32.partialorder %v1468_v61, 8.507059e+37 }
 0x230   : > { %v1510_v46 = vmul.f32 %v2510_v60, %v3073_v17  ;;  %2513 = vpow2.f32 %v2380_v5  ;;  %vm1515_vm5 = vweird.f32 %v2510_v60  ;;  %v1502_v54 = vsel %vm3136_vm4, %v3066_v16, %v1498_v45 }
 0x231   : > { %2515 = vrcp.f32 %v3112_v11  ;;  %v2512_v43 = vpop.eup %2511  ;;  %vm1516_vm9 = vmor %vm1514_vm7, %vm1515_vm5  ;;  %v1521_v16 = vor.u32 1.1754944e-38, %v1520_v50  ;;  %v1507_v55 = vsel %vm1504_vm8, %v1506_v24, %v1502_v54  ;;  %v1452_v5 = vsel %vm3156_vm11, %v3049_v3, %v1448_v62 }
 0x232   : > { %v1511_v20 = vsub.f32 1.0, %v1510_v46  ;;  %2517 = vtanh.f32 %v3110_v26  ;;  %v1562_v41 = vmul.f32 %v2512_v43, %v1507_v55  ;;  %v1471_v3 = vor.u32 1.1754944e-38, %v1470_v59 }
 0x233   : > { %2519 = vtanh.f32 %v1299_v52  ;;  %v1456_v52 = vor.u32 1.1754944e-38, %v1455_v8  ;;  %v1535_v7 = vand.u32 2147483648, %v3112_v11  ;;  %vm1529_vm3 = vweird.f32 %v3112_v11 }
 0x234   : > { %v1512_v31 = vmul.f32 %v2510_v60, %v1511_v20  ;;  %2521 = vtanh.f32 %v1300_v18  ;;  %v1472_v21 = vsel %vm1469_vm15, %v1471_v3, %v1467_v39  ;;  %v1533_v50 = vand.u32 2147483647, %v3112_v11 }
 0x235   : > { %v1457_v18 = vsel %vm1454_vm14, %v1456_v52, %v1452_v5  ;;  %v1536_v62 = vor.u32 1.1754944e-38, %v1535_v7 }
 0x236   : > { %v2514_v4 = vpop.eup %2513  ;;  %v1513_v1 = vadd.f32 %v2510_v60, %v1512_v31  ;;  %vm1534_vm6 = vcmp.eq.f32.partialorder %v1533_v50, 8.507059e+37 }
 0x237   : > { %v2516_v49 = vpop.eup %2515  ;;  %v1493_v53 = vadd.f32 1.0, %v2514_v4 }
 0x238   : > { %v1525_v37 = vmul.f32 %v2516_v49, %v3112_v11  ;;  %v1517_v25 = vsel %vm1516_vm9, %v2510_v60, %v1513_v1  ;;  %v2518_v42 = vpop.eup %2517  ;;  %vm1530_vm1 = vweird.f32 %v2516_v49  ;;  %v2479_v60 = vld [vmem:[%s3449_s14 + $0x1] ss:$0 sm:$0xff] }
 0x239   : > { %2523 = vrcp.f32 %v1493_v53  ;;  %v1522_v0 = vsel %vm1519_vm10, %v1521_v16, %v1517_v25  ;;  %v2520_v45 = vpop.eup %2519  ;;  %vm1531_vm4 = vmor %vm1529_vm3, %vm1530_vm1  ;;  %v1550_v31 = vand.u32 2147483648, %v1493_v53  ;;  %v1548_v43 = vand.u32 2147483647, %v1493_v53 }
 0x23a   : > { %v1526_v9 = vsub.f32 1.0, %v1525_v37  ;;  %v1563_v46 = vmul.f32 %v2518_v42, %v1522_v0  ;;  %v2522_v13 = vpop.eup %2521  ;;  %v3178_v20 = vmul.f32 %v2520_v45, %v1457_v18  ;;  %vm1544_vm7 = vweird.f32 %v1493_v53  ;;  %v1336_v42 = vpop.f32.mrf.mxu1 }
 0x23b   : > { %v3182_v27 = vmul.f32 %v2522_v13, %v1472_v21  ;;  %v1551_v1 = vor.u32 1.1754944e-38, %v1550_v31  ;;  %vm1549_vm9 = vcmp.eq.f32.partialorder %v1548_v43, 8.507059e+37  ;;  %v1377_v0 = vpop.f32.mrf.mxu0 }
 0x23c   : > { %v1566_v22 = vpack.c.bf16 %v1563_v46, %v1562_v41  ;;  %v1527_v30 = vmul.f32 %v2516_v49, %v1526_v9  ;;  %2525 = vtanh.f32 %v3178_v20  ;;  %v1208_v9 = vadd.f32 %v2479_v60, %v2958_v48 }
 0x23d   : > { %2527 = vtanh.f32 %v3182_v27 }
 0x23e   : > { %2389 = vmatmul.msk.bf16.vlgmr.msra.gmra.mxu2 %vm652_vm0, %v1566_v22  ;;  %2399 = vmatmul.msk.bf16.vlgmr.msrb.gmra.mxu3 %vm652_vm0, %v1566_v22  ;;  %v1528_v14 = vadd.f32 %v2516_v49, %v1527_v30  ;;  %v1209_v30 = vadd.f32 %v2479_v60, %v2962_v56  ;;  %v1290_v56 = vadd.f32 %v2990_v12, %v2988_v6 }
 0x23f   : > { %v2524_v8 = vpop.eup %2523  ;;  %2409 = vmatmul.msk.bf16.vlgmr.msrb.gmra.mxu1 %vm652_vm0, %v1566_v22  ;;  %v1211_v6 = vadd.f32 %v2479_v60, %v2977_v32 }
 0x240   : > { %v1540_v58 = vmul.f32 %v2524_v8, %v1493_v53  ;;  %v1532_v54 = vsel %vm1531_vm4, %v2516_v49, %v1528_v14  ;;  %vm1545_vm5 = vweird.f32 %v2524_v8  ;;  %v748_v49 = vpop.permute.xlu2 %747 }
 0x241   : > { %v1537_v4 = vsel %vm1534_vm6, %v1536_v62, %v1532_v54  ;;  %vm1546_vm8 = vmor %vm1544_vm7, %vm1545_vm5  ;;  %vm749_vm10 = vcmp.eq.s32.totalorder %v2790_v34, %v748_v49  ;;  %v1210_v62 = vadd.f32 %v2479_v60, %v2969_v63 }
 0x242   : > { %v1541_v23 = vsub.f32 1.0, %v1540_v58  ;;  %v2526_v51 = vpop.eup %2525  ;;  %v2251_v53 = vsel %vm749_vm10, 1.0, %v2610_v36  ;;  %v1338_v17 = vpop.f32.mrf.mxu1 }
 0x243   : > { %v2528_v55 = vpop.eup %2527  ;;  %v1564_v59 = vmul.f32 %v2526_v51, %v1537_v4  ;;  %v1379_v13 = vpop.f32.mrf.mxu0 }
 0x244   : > { %v1542_v38 = vmul.f32 %v2524_v8, %v1541_v23  ;;  %v1380_v4 = vadd.f32 %v1379_v13, %v1338_v17 }
 0x246   : > { %v1543_v24 = vadd.f32 %v2524_v8, %v1542_v38 }
 0x248   : > { %v1547_v16 = vsel %vm1546_vm8, %v2524_v8, %v1543_v24 }
 0x249   : > { %v1552_v11 = vsel %vm1549_vm9, %v1551_v1, %v1547_v16 }
 0x24a   : > { %v1565_v37 = vmul.f32 %v2528_v55, %v1552_v11  ;;  %v1341_v61 = vpop.f32.mrf.mxu1  ;;  %v1303_v55 = vadd.f32 %v2967_v10, %v1290_v56  ;;  %v3232_v10 = vadd.f32 %v2995_v44, %v1380_v4 }
 0x24b   : > { %v1382_v50 = vpop.f32.mrf.mxu0 }
 0x24c   : > { %v1567_v25 = vpack.c.bf16 %v1565_v37, %v1564_v59 }
 0x24e   : > { %2390 = vmatmul.msk.bf16.gmra.mxu2 %vm652_vm0, %v1567_v25  ;;  %2400 = vmatmul.msk.bf16.gmra.mxu3 %vm652_vm0, %v1567_v25 }
 0x24f   : > { %2410 = vmatmul.msk.bf16.gmra.mxu1 %vm652_vm0, %v1567_v25 }
 0x252   : > { %v3198_v5 = vpop.f32.mrf.mxu1 }
 0x25e   : > { %2419 = vmatmul.msk.bf16.vlgmr.msrb.gmra.mxu2 %vm652_vm0, %v1566_v22 }
 0x25f   : > { %2434 = vmatmul.msk.f32.vlgmr.msra.gmra.mxu1 %vm818_vm2, %v2251_v53  ;;  %v1384_v53 = vpop.f32.mrf.mxu0 }
 0x26e   : > { %2420 = vmatmul.msk.bf16.gmra.mxu2 %vm652_vm0, %v1567_v25  ;;  %v1383_v25 = vadd.f32 %v1382_v50, %v1341_v61 }
 0x2bc   : > { %v1665_v45 = vpop.f32.mrf.mxu1 }
 0x2bd   : > { %v1675_v38 = vadd.f32 %v1665_v45, %v2972_v2 }
 0x2c1   : > { %v1595_v41 = vpop.f32.mrf.mxu2  ;;  %v1630_v46 = vpop.f32.mrf.mxu3 }
 0x2c2   : > { %v1605_v52 = vadd.f32 %v1595_v41, %v2935_v15  ;;  %v1640_v39 = vadd.f32 %v1630_v46, %v1208_v9 }
 0x2c4   : > { %v2421_v3 = vmul.f32 -1.442695, %v1605_v52  ;;  %v2425_v22 = vmul.f32 -1.442695, %v1640_v39  ;;  %v1667_v48 = vpop.f32.mrf.mxu1 }
 0x2c6   : > { %2529 = vpow2.f32 %v2421_v3  ;;  %v3245_v3 = vadd.f32 %v1384_v53, %v3198_v5 }
 0x2c7   : > { %2531 = vpow2.f32 %v2425_v22  ;;  %v3250_v22 = vadd.f32 %v2995_v44, %v1383_v25 }
 0x2c9   : > { %v1597_v18 = vpop.f32.mrf.mxu2  ;;  %v1632_v21 = vpop.f32.mrf.mxu3 }
 0x2ca   : > { %v1606_v8 = vadd.f32 %v1597_v18, %v2938_v19  ;;  %v1641_v58 = vadd.f32 %v1632_v21, %v1209_v30  ;;  %v1378_v19 = vadd.f32 %v1377_v0, %v1336_v42  ;;  %v1676_v0 = vadd.f32 %v1667_v48, %v2980_v40 }
 0x2cc   : > { %v2530_v14 = vpop.eup %2529  ;;  %v2422_v7 = vmul.f32 -1.442695, %v1606_v8  ;;  %v2426_v15 = vmul.f32 -1.442695, %v1641_v58  ;;  %v3225_v37 = vadd.f32 %v2995_v44, %v1378_v19  ;;  %v1670_v49 = vpop.f32.mrf.mxu1 }
 0x2cd   : > { %v2532_v23 = vpop.eup %2531  ;;  %v3207_v31 = vadd.f32 1.0, %v2530_v14  ;;  %v1677_v52 = vadd.f32 %v1670_v49, %v1303_v55 }
 0x2ce   : > { %v3209_v54 = vadd.f32 1.0, %v2532_v23  ;;  %2533 = vpow2.f32 %v2422_v7 }
 0x2cf   : > { %2535 = vrcp.f32 %v3207_v31  ;;  %v1741_v42 = vand.u32 2147483648, %v3207_v31  ;;  %v1739_v60 = vand.u32 2147483647, %v3207_v31  ;;  %vm1735_vm2 = vweird.f32 %v3207_v31 }
 0x2d0   : > { %2537 = vrcp.f32 %v3209_v54  ;;  %v1815_v9 = vand.u32 2147483647, %v3209_v54  ;;  %v1817_v45 = vand.u32 2147483648, %v3209_v54  ;;  %vm1811_vm11 = vweird.f32 %v3209_v54 }
 0x2d1   : > { %2539 = vpow2.f32 %v2426_v15  ;;  %v1600_v43 = vpop.f32.mrf.mxu2  ;;  %v1635_v24 = vpop.f32.mrf.mxu3  ;;  %v1742_v18 = vor.u32 1.1754944e-38, %v1741_v42  ;;  %vm3256_vm12 = vcmp.eq.f32.partialorder %v1739_v60, 8.507059e+37 }
 0x2d2   : > { %v1607_v1 = vadd.f32 %v1600_v43, %v2942_v29  ;;  %v1642_v51 = vadd.f32 %v1635_v24, %v1210_v62  ;;  %2541 = vtanh.f32 %v1675_v38  ;;  %vm3261_vm13 = vcmp.eq.f32.partialorder %v1815_v9, 8.507059e+37 }
 0x2d3   : > { %v1818_v23 = vor.u32 1.1754944e-38, %v1817_v45 }
 0x2d4   : > { %v2534_v16 = vpop.eup %2533  ;;  %v2423_v11 = vmul.f32 -1.442695, %v1607_v1  ;;  %v2427_v2 = vmul.f32 -1.442695, %v1642_v51 }
 0x2d5   : > { %v3220_v12 = vpop.eup %2535  ;;  %v3222_v59 = vadd.f32 1.0, %v2534_v16 }
 0x2d6   : > { %v3227_v63 = vpop.eup %2537  ;;  %v1731_v29 = vmul.f32 %v3220_v12, %v3207_v31  ;;  %2543 = vpow2.f32 %v2423_v11  ;;  %vm1736_vm14 = vweird.f32 %v3220_v12 }
 0x2d7   : > { %v2540_v32 = vpop.eup %2539  ;;  %v1807_v17 = vmul.f32 %v3227_v63, %v3209_v54  ;;  %2545 = vrcp.f32 %v3222_v59  ;;  %v1754_v50 = vand.u32 2147483647, %v3222_v59  ;;  %vm1812_vm15 = vweird.f32 %v3227_v63  ;;  %vm3282_vm1 = vmor %vm1735_vm2, %vm1736_vm14 }
 0x2d8   : > { %v1732_v61 = vsub.f32 1.0, %v1731_v29  ;;  %v3241_v41 = vadd.f32 1.0, %v2540_v32  ;;  %2547 = vpow2.f32 %v2427_v2  ;;  %v3252_v30 = vpop.eup %2541  ;;  %vm1750_vm3 = vweird.f32 %v3222_v59  ;;  %vm3304_vm6 = vmor %vm1811_vm11, %vm1812_vm15 }
 0x2d9   : > { %v1808_v46 = vsub.f32 1.0, %v1807_v17  ;;  %v1602_v39 = vpop.f32.mrf.mxu2  ;;  %v1637_v13 = vpop.f32.mrf.mxu3  ;;  %vm3287_vm4 = vcmp.eq.f32.partialorder %v1754_v50, 8.507059e+37 }
 0x2da   : > { %v1733_v40 = vmul.f32 %v3220_v12, %v1732_v61  ;;  %2549 = vrcp.f32 %v3241_v41  ;;  %v1608_v14 = vadd.f32 %v1602_v39, %v2944_v35  ;;  %v1643_v48 = vadd.f32 %v1637_v13, %v1211_v6 }
 0x2db   : > { %2551 = vtanh.f32 %v1676_v0  ;;  %v1809_v5 = vmul.f32 %v3227_v63, %v1808_v46  ;;  %v1756_v35 = vand.u32 2147483648, %v3222_v59  ;;  %v1830_v2 = vand.u32 2147483647, %v3241_v41 }
 0x2dc   : > { %v2544_v21 = vpop.eup %2543  ;;  %2553 = vtanh.f32 %v1677_v52  ;;  %v1734_v56 = vadd.f32 %v3220_v12, %v1733_v40  ;;  %v2424_v38 = vmul.f32 -1.442695, %v1608_v14  ;;  %v2428_v62 = vmul.f32 -1.442695, %v1643_v48 }
 0x2dd   : > { %v2546_v7 = vpop.eup %2545  ;;  %v3267_v15 = vadd.f32 1.0, %v2544_v21  ;;  %v1810_v4 = vadd.f32 %v3227_v63, %v1809_v5  ;;  %v1757_v53 = vor.u32 1.1754944e-38, %v1756_v35  ;;  %vm1826_vm7 = vweird.f32 %v3241_v41 }
 0x2de   : > { %v1746_v19 = vmul.f32 %v2546_v7, %v3222_v59  ;;  %v2548_v43 = vpop.eup %2547  ;;  %vm1751_vm5 = vweird.f32 %v2546_v7  ;;  %v1738_v31 = vsel %vm3282_vm1, %v3220_v12, %v1734_v56  ;;  %v1832_v12 = vand.u32 2147483648, %v3241_v41 }
 0x2df   : > { %2555 = vrcp.f32 %v3267_v15  ;;  %v3278_v51 = vadd.f32 1.0, %v2548_v43  ;;  %v1814_v61 = vsel %vm3304_vm6, %v3227_v63, %v1810_v4  ;;  %vm1752_vm8 = vmor %vm1750_vm3, %vm1751_vm5  ;;  %vm3317_vm9 = vcmp.eq.f32.partialorder %v1830_v2, 8.507059e+37 }
 0x2e0   : > { %v3275_v24 = vpop.eup %2549  ;;  %v1747_v1 = vsub.f32 1.0, %v1746_v19  ;;  %2557 = vpow2.f32 %v2424_v38  ;;  %v1743_v46 = vsel %vm3256_vm12, %v1742_v18, %v1738_v31  ;;  %v1819_v45 = vsel %vm3261_vm13, %v1818_v23, %v1814_v61 }
 0x2e1   : > { %v2552_v16 = vpop.eup %2551  ;;  %v1822_v6 = vmul.f32 %v3275_v24, %v3241_v41  ;;  %v1700_v25 = vpop.f32.mrf.mxu2  ;;  %2559 = vrcp.f32 %v3278_v51  ;;  %vm1827_vm10 = vweird.f32 %v3275_v24  ;;  %v1946_v39 = vmul.f32 %v1819_v45, %v3095_v47 }
 0x2e2   : > { %v1748_v29 = vmul.f32 %v2546_v7, %v1747_v1  ;;  %v3298_v49 = vpop.eup %2553  ;;  %2561 = vpow2.f32 %v2428_v62  ;;  %v1710_v17 = vadd.f32 %v1700_v25, %v3225_v37  ;;  %v1769_v5 = vand.u32 2147483647, %v3267_v15  ;;  %vm3342_vm2 = vmor %vm1826_vm7, %vm1827_vm10 }
 0x2e3   : > { %v1823_v42 = vsub.f32 1.0, %v1822_v6  ;;  %v1950_v14 = vmul.f32 %v3252_v30, %v1743_v46  ;;  %v1833_v23 = vor.u32 1.1754944e-38, %v1832_v12  ;;  %vm1765_vm11 = vweird.f32 %v3267_v15 }
 0x2e4   : > { %v1749_v0 = vadd.f32 %v2546_v7, %v1748_v29  ;;  %v2429_v37 = vmul.f32 -1.442695, %v1710_v17  ;;  %vm3355_vm13 = vcmp.eq.f32.partialorder %v1769_v5, 8.507059e+37  ;;  %v1847_v1 = vand.u32 2147483648, %v3278_v51 }
 0x2e5   : > { %v2556_v60 = vpop.eup %2555  ;;  %v1824_v54 = vmul.f32 %v3275_v24, %v1823_v42  ;;  %v3353_v62 = vadd.f32 %v1950_v14, %v1946_v39  ;;  %v1845_v11 = vand.u32 2147483647, %v3278_v51  ;;  %vm1841_vm1 = vweird.f32 %v3278_v51 }
 0x2e6   : > { %v2558_v52 = vpop.eup %2557  ;;  %v1761_v63 = vmul.f32 %v2556_v60, %v3267_v15  ;;  %v1753_v59 = vsel %vm1752_vm8, %v2546_v7, %v1749_v0  ;;  %2563 = vpow2.f32 %v2429_v37  ;;  %v1771_v7 = vand.u32 2147483648, %v3267_v15  ;;  %v1672_v15 = vpop.f32.mrf.mxu1 }
 0x2e7   : > { %v1825_v13 = vadd.f32 %v3275_v24, %v1824_v54  ;;  %v3329_v40 = vadd.f32 1.0, %v2558_v52  ;;  %v1758_v21 = vsel %vm3287_vm4, %v1757_v53, %v1753_v59  ;;  %v2560_v18 = vpop.eup %2559  ;;  %vm1766_vm12 = vweird.f32 %v2556_v60 }
 0x2e8   : > { %v1762_v8 = vsub.f32 1.0, %v1761_v63  ;;  %v1951_v58 = vmul.f32 %v2552_v16, %v1758_v21  ;;  %v2562_v48 = vpop.eup %2561  ;;  %v1837_v47 = vmul.f32 %v2560_v18, %v3278_v51  ;;  %vm1767_vm14 = vmor %vm1765_vm11, %vm1766_vm12  ;;  %v1772_v55 = vor.u32 1.1754944e-38, %v1771_v7 }
 0x2e9   : > { %2565 = vrcp.f32 %v3329_v40  ;;  %v1702_v50 = vpop.f32.mrf.mxu2  ;;  %v3347_v30 = vadd.f32 1.0, %v2562_v48  ;;  %v1829_v35 = vsel %vm3342_vm2, %v3275_v24, %v1825_v13  ;;  %vm1842_vm15 = vweird.f32 %v2560_v18 }
 0x2ea   : > { %v1763_v19 = vmul.f32 %v2556_v60, %v1762_v8  ;;  %v1838_v38 = vsub.f32 1.0, %v1837_v47  ;;  %v1711_v43 = vadd.f32 %v1702_v50, %v3232_v10  ;;  %v1834_v25 = vsel %vm3317_vm9, %v1833_v23, %v1829_v35  ;;  %vm1843_vm3 = vmor %vm1841_vm1, %vm1842_vm15 }
 0x2eb   : > { %2567 = vrcp.f32 %v3347_v30  ;;  %v1678_v32 = vadd.f32 %v1672_v15, %v3029_v28  ;;  %v1848_v42 = vor.u32 1.1754944e-38, %v1847_v1  ;;  %vm1846_vm4 = vcmp.eq.f32.partialorder %v1845_v11, 8.507059e+37 }
 0x2ec   : > { %v1764_v41 = vadd.f32 %v2556_v60, %v1763_v19  ;;  %v2564_v16 = vpop.eup %2563  ;;  %v1839_v10 = vmul.f32 %v2560_v18, %v1838_v38  ;;  %v2430_v6 = vmul.f32 -1.442695, %v1711_v43  ;;  %v1786_v28 = vand.u32 2147483648, %v3329_v40 }
 0x2ed   : > { %v3362_v24 = vadd.f32 1.0, %v2564_v16  ;;  %v1784_v63 = vand.u32 2147483647, %v3329_v40  ;;  %vm1780_vm6 = vweird.f32 %v3329_v40  ;;  %v1860_v5 = vand.u32 2147483647, %v3347_v30 }
 0x2ee   : > { %v1768_v2 = vsel %vm1767_vm14, %v2556_v60, %v1764_v41  ;;  %v1840_v31 = vadd.f32 %v2560_v18, %v1839_v10  ;;  %v1947_v60 = vmul.f32 %v1834_v25, %v3110_v26  ;;  %v1397_v48 = vadd.f32 %v2995_v44, %v3245_v3 }
 0x2ef   : > { %v2566_v29 = vpop.eup %2565  ;;  %v1773_v53 = vsel %vm3355_vm13, %v1772_v55, %v1768_v2  ;;  %2569 = vrcp.f32 %v3362_v24  ;;  %vm1785_vm9 = vcmp.eq.f32.partialorder %v1784_v63, 8.507059e+37  ;;  %vm1856_vm10 = vweird.f32 %v3347_v30 }
 0x2f0   : > { %v1776_v17 = vmul.f32 %v2566_v29, %v3329_v40  ;;  %v1952_v0 = vmul.f32 %v3298_v49, %v1773_v53  ;;  %2571 = vpow2.f32 %v2430_v6  ;;  %v1844_v61 = vsel %vm1843_vm3, %v2560_v18, %v1840_v31 }
 0x2f1   : > { %v1705_v12 = vpop.f32.mrf.mxu2  ;;  %v2568_v51 = vpop.eup %2567  ;;  %v1849_v37 = vsel %vm1846_vm4, %v1848_v42, %v1844_v61  ;;  %2573 = vtanh.f32 %v1678_v32  ;;  %v1955_v52 = vadd.f32 %v1951_v58, %v1947_v60  ;;  %vm1781_vm5 = vweird.f32 %v2566_v29 }
 0x2f2   : > { %v1777_v54 = vsub.f32 1.0, %v1776_v17  ;;  %v1712_v9 = vadd.f32 %v1705_v12, %v3250_v22  ;;  %v1852_v46 = vmul.f32 %v2568_v51, %v3347_v30  ;;  %v1948_v45 = vmul.f32 %v1849_v37, %v3178_v20  ;;  %vm1782_vm7 = vmor %vm1780_vm6, %vm1781_vm5 }
 0x2f3   : > { %v1787_v22 = vor.u32 1.1754944e-38, %v1786_v28  ;;  %v1862_v18 = vand.u32 2147483648, %v3347_v30  ;;  %vm1857_vm8 = vweird.f32 %v2568_v51  ;;  %vm1861_vm11 = vcmp.eq.f32.partialorder %v1860_v5, 8.507059e+37 }
 0x2f4   : > { %v1778_v49 = vmul.f32 %v2566_v29, %v1777_v54  ;;  %v2431_v59 = vmul.f32 -1.442695, %v1712_v9  ;;  %v1853_v26 = vsub.f32 1.0, %v1852_v46  ;;  %v3380_v39 = vadd.f32 %v1952_v0, %v1948_v45  ;;  %vm1858_vm2 = vmor %vm1856_vm10, %vm1857_vm8 }
 0x2f5   : > { %v2570_v13 = vpop.eup %2569  ;;  %v1863_v19 = vor.u32 1.1754944e-38, %v1862_v18  ;;  %v1897_v4 = vand.u32 2147483648, %v3362_v24  ;;  %v1895_v16 = vand.u32 2147483647, %v3362_v24  ;;  %vm1891_vm13 = vweird.f32 %v3362_v24 }
 0x2f6   : > { %v1779_v21 = vadd.f32 %v2566_v29, %v1778_v49  ;;  %2575 = vpow2.f32 %v2431_v59  ;;  %v2572_v8 = vpop.eup %2571  ;;  %v1854_v20 = vmul.f32 %v2568_v51, %v1853_v26  ;;  %v1887_v58 = vmul.f32 %v2570_v13, %v3362_v24 }
 0x2f7   : > { %v1883_v40 = vadd.f32 1.0, %v2572_v8  ;;  %v2574_v23 = vpop.eup %2573  ;;  %vm1892_vm12 = vweird.f32 %v2570_v13  ;;  %v1898_v2 = vor.u32 1.1754944e-38, %v1897_v4  ;;  %vm1896_vm15 = vcmp.eq.f32.partialorder %v1895_v16, 8.507059e+37 }
 0x2f8   : > { %v1783_v14 = vsel %vm1782_vm7, %v2566_v29, %v1779_v21  ;;  %v1855_v7 = vadd.f32 %v2568_v51, %v1854_v20  ;;  %v1888_v56 = vsub.f32 1.0, %v1887_v58  ;;  %vm1893_vm14 = vmor %vm1891_vm13, %vm1892_vm12  ;;  %v753_v63 = vshrl.u32 %v644_v33, 7 }
 0x2f9   : > { %v1707_v47 = vpop.f32.mrf.mxu2  ;;  %v1788_v50 = vsel %vm1785_vm9, %v1787_v22, %v1783_v14  ;;  %2577 = vrcp.f32 %v1883_v40  ;;  %v1910_v0 = vand.u32 2147483647, %v1883_v40  ;;  %v1912_v24 = vand.u32 2147483648, %v1883_v40 }
 0x2fa   : > { %v1713_v38 = vadd.f32 %v1707_v47, %v1397_v48  ;;  %v1953_v43 = vmul.f32 %v2574_v23, %v1788_v50  ;;  %v1859_v35 = vsel %vm1858_vm2, %v2568_v51, %v1855_v7  ;;  %v1889_v41 = vmul.f32 %v2570_v13, %v1888_v56 }
 0x2fb   : > { %v1864_v44 = vsel %vm1861_vm11, %v1863_v19, %v1859_v35  ;;  %2579 = vtanh.f32 %v3353_v62  ;;  %vm1906_vm3 = vweird.f32 %v1883_v40  ;;  %vm1911_vm5 = vcmp.eq.f32.partialorder %v1910_v0, 8.507059e+37  ;;  %v2009_v35 = vpop.f32.mrf.mxu1 }
 0x2fc   : > { %v2576_v1 = vpop.eup %2575  ;;  %v2432_v15 = vmul.f32 -1.442695, %v1713_v38  ;;  %v1949_v30 = vmul.f32 %v1864_v44, %v3182_v27  ;;  %v1890_v55 = vadd.f32 %v2570_v13, %v1889_v41  ;;  %v1913_v54 = vor.u32 1.1754944e-38, %v1912_v24  ;;  %v2015_v38 = vld [vmem:[%s3442_s7 + $0x18] sm:$0xff] }
 0x2fd   : > { %v1884_v3 = vadd.f32 1.0, %v2576_v1  ;;  %v756_v20 = vadd.s32 1, %v753_v63  ;;  %v754_v48 = vmul.u32 4, %v753_v63  ;;  %v2480_v1 = vld [vmem:[%s3443_s8] ss:$0 sm:$0xff] }
 0x2fe   : > { %2581 = vpow2.f32 %v2432_v15  ;;  %v1957_v10 = vadd.f32 %v1953_v43, %v1949_v30  ;;  %v1894_v6 = vsel %vm1893_vm14, %v2570_v13, %v1890_v55  ;;  %v2014_v43 = vld [vmem:[%s3442_s7 + $0x10] sm:$0xff] }
 0x2ff   : > { %2583 = vrcp.f32 %v1884_v3  ;;  %v2578_v11 = vpop.eup %2577  ;;  %v1899_v31 = vsel %vm1896_vm15, %v1898_v2, %v1894_v6  ;;  %v1927_v51 = vand.u32 2147483648, %v1884_v3  ;;  %v1925_v37 = vand.u32 2147483647, %v1884_v3 }
 0x300   : > { %v1902_v25 = vmul.f32 %v2578_v11, %v1883_v40  ;;  %2585 = vtanh.f32 %v1955_v52  ;;  %vm1907_vm1 = vweird.f32 %v2578_v11  ;;  %vm1921_vm7 = vweird.f32 %v1884_v3 }
 0x301   : > { %v2580_v29 = vpop.eup %2579  ;;  %vm1908_vm4 = vmor %vm1906_vm3, %vm1907_vm1  ;;  %v1928_v26 = vor.u32 1.1754944e-38, %v1927_v51  ;;  %vm1926_vm9 = vcmp.eq.f32.partialorder %v1925_v37, 8.507059e+37  ;;  %v757_v33 = vmul.u32 4, %v756_v20  ;;  %vm755_vm13 = vcmp.ge.s32.totalorder %v2790_v34, %v754_v48 }
 0x302   : > { %v1903_v62 = vsub.f32 1.0, %v1902_v25  ;;  %v3393_v32 = vmul.f32 %v2580_v29, %v1899_v31  ;;  %v2068_v31 = vld [vmem:[%s607_s24] sm:$0xff]  ;;  %vm2066_vm1 = vcmask 7168  }
 0x303   : > { %vm758_vm14 = vcmp.lt.s32.totalorder %v2790_v34, %v757_v33  ;;  %v2013_v34 = vld [vmem:[%s3442_s7 + $0x8] sm:$0xff] }
 0x304   : > { %v2582_v27 = vpop.eup %2581  ;;  %v1904_v17 = vmul.f32 %v2578_v11, %v1903_v62  ;;  %vm759_vm15 = vmand %vm755_vm13, %vm758_vm14 }
 0x305   : > { %v2584_v53 = vpop.eup %2583  ;;  %v1885_v42 = vadd.f32 1.0, %v2582_v27  ;;  %v2252_v19 = vsel %vm759_vm15, 1.0, %v2610_v36  ;;  %v2012_v36 = vld [vmem:[%s3442_s7] sm:$0xff] }
 0x306   : > { %v1917_v12 = vmul.f32 %v2584_v53, %v1884_v3  ;;  %v1905_v60 = vadd.f32 %v2578_v11, %v1904_v17  ;;  %v2586_v28 = vpop.eup %2585  ;;  %vm1922_vm6 = vweird.f32 %v2584_v53 }
 0x307   : > { %2587 = vrcp.f32 %v1885_v42  ;;  %vm1923_vm8 = vmor %vm1921_vm7, %vm1922_vm6  ;;  %v1942_v5 = vand.u32 2147483648, %v1885_v42  ;;  %v1940_v14 = vand.u32 2147483647, %v1885_v42  ;;  %vm1936_vm2 = vweird.f32 %v1885_v42 }
 0x308   : > { %v1918_v61 = vsub.f32 1.0, %v1917_v12  ;;  %2589 = vtanh.f32 %v3380_v39  ;;  %v1909_v46 = vsel %vm1908_vm4, %v2578_v11, %v1905_v60 }
 0x309   : > { %v1914_v45 = vsel %vm1911_vm5, %v1913_v54, %v1909_v46  ;;  %2591 = vtanh.f32 %v1957_v10  ;;  %v1943_v23 = vor.u32 1.1754944e-38, %v1942_v5  ;;  %vm1941_vm12 = vcmp.eq.f32.partialorder %v1940_v14, 8.507059e+37 }
 0x30a   : > { %v1919_v9 = vmul.f32 %v2584_v53, %v1918_v61  ;;  %v1963_v49 = vmul.f32 %v2586_v28, %v1914_v45 }
 0x30c   : > { %v1920_v52 = vadd.f32 %v2584_v53, %v1919_v9 }
 0x30d   : > { %v2588_v59 = vpop.eup %2587 }
 0x30e   : > { %v1932_v13 = vmul.f32 %v2588_v59, %v1885_v42  ;;  %v1924_v21 = vsel %vm1923_vm8, %v2584_v53, %v1920_v52  ;;  %v2590_v39 = vpop.eup %2589  ;;  %vm1937_vm10 = vweird.f32 %v2588_v59 }
 0x30f   : > { %v1929_v22 = vsel %vm1926_vm9, %v1928_v26, %v1924_v21  ;;  %vm1938_vm11 = vmor %vm1936_vm2, %vm1937_vm10  ;;  %v2592_v47 = vpop.eup %2591 }
 0x310   : > { %v1933_v18 = vsub.f32 1.0, %v1932_v13  ;;  %v1964_v8 = vmul.f32 %v2590_v39, %v1929_v22 }
 0x312   : > { %v1934_v58 = vmul.f32 %v2588_v59, %v1933_v18 }
 0x314   : > { %v1935_v40 = vadd.f32 %v2588_v59, %v1934_v58 }
 0x316   : > { %v1939_v7 = vsel %vm1938_vm11, %v2588_v59, %v1935_v40 }
 0x317   : > { %v1944_v50 = vsel %vm1941_vm12, %v1943_v23, %v1939_v7 }
 0x318   : > { %v1965_v56 = vmul.f32 %v2592_v47, %v1944_v50 }
 0x31a   : > { %1981 = vmatpush.msra.mxu3 %v1965_v56 }
 0x31c   : > { %1982 = vmatpush.msra.mxu3 %v1964_v8 }
 0x31e   : > { %1983 = vmatpush.msra.mxu3 %v1963_v49 }
 0x320   : > { %1984 = vmatpush.msra.mxu3 %v3393_v32 }
 0x321   : > { %2433 = vmatmul.msk.f32.vlgmr.msra.gmra.mxu3 %vm652_vm0, %v2252_v19 }
 0x322   : > { %2035 = vmatpush.msrb.mxu3 %v2015_v38 }
 0x324   : > { %2036 = vmatpush.msrb.mxu3 %v2014_v43 }
 0x326   : > { %2037 = vmatpush.msrb.mxu3 %v2013_v34 }
 0x328   : > { %2038 = vmatpush.msrb.mxu3 %v2012_v36 }
 0x3a4   : > { %v1986_v41 = vpop.f32.mrf.mxu3 }
 0x3a5   : > { %v2010_v4 = vadd.f32 %v2009_v35, %v1986_v41 }
 0x3a7   : > { %2435 = vmatmul.msk.f32.vlgmr.msrb.gmra.mxu3 %vm652_vm0, %v2010_v4 }
 0x42a   : > { %v2040_v15 = vpop.f32.mrf.mxu3 }
 0x42b   : > { %v2041_v44 = vadd.f32 %v2480_v1, %v2040_v15 }
 0x42d   : > { %v2043_v3 = vmul.f32 %v2041_v44, %v2924_v57 }
 0x42f   : > { %v2044_v30 = vsel %vm652_vm0, %v2043_v3, 0.0 }
 0x430   : > { %2045 = vadd.xlane.f32.xlu0 %v2044_v30 }
 0x4a3   : > { %v2046_v16 = vpop.xlane.xlu0 %2045 }
 0x4a4   : > { %v2436_v55 = vmul.f32 -1.442695, %v2046_v16  ;;  %v2072_v10 = vand.u32 2147483647, %v2046_v16  ;;  %v2069_v32 = vmax.f32 %v2046_v16, 0.0  ;;  %v2070_v27 = vmul.f32 %v2068_v31, %v2046_v16 }
 0x4a6   : > { %2593 = vpow2.f32 %v2436_v55  ;;  %v2073_v11 = vsub.f32 0.0, %v2072_v10  ;;  %v2071_v24 = vsub.f32 %v2069_v32, %v2070_v27 }
 0x4a8   : > { %v2074_v6 = vmul.f32 1.442695, %v2073_v11 }
 0x4aa   : > { %2595 = vpow2.f32 %v2074_v6 }
 0x4ac   : > { %v2594_v2 = vpop.eup %2593 }
 0x4ad   : > { %v2050_v25 = vadd.f32 1.0, %v2594_v2 }
 0x4af   : > { %2597 = vrcp.f32 %v2050_v25  ;;  %v2062_v0 = vand.u32 2147483648, %v2050_v25  ;;  %v2060_v61 = vand.u32 2147483647, %v2050_v25  ;;  %vm2056_vm3 = vweird.f32 %v2050_v25 }
 0x4b0   : > { %v2596_v29 = vpop.eup %2595 }
 0x4b1   : > { %v2076_v57 = vadd.f32 1.0, %v2596_v29  ;;  %v2063_v28 = vor.u32 1.1754944e-38, %v2062_v0  ;;  %vm2061_vm5 = vcmp.eq.f32.partialorder %v2060_v61, 8.507059e+37 }
 0x4b3   : > { %2599 = vlog2.f32 %v2076_v57 }
 0x4b5   : > { %v2598_v62 = vpop.eup %2597 }
 0x4b6   : > { %v2052_v53 = vmul.f32 %v2598_v62, %v2050_v25  ;;  %vm2057_vm0 = vweird.f32 %v2598_v62 }
 0x4b7   : > { %vm2058_vm4 = vmor %vm2056_vm3, %vm2057_vm0 }
 0x4b8   : > { %v2053_v42 = vsub.f32 1.0, %v2052_v53 }
 0x4b9   : > { %v2600_v17 = vpop.eup %2599 }
 0x4ba   : > { %v2054_v12 = vmul.f32 %v2598_v62, %v2053_v42  ;;  %v2078_v60 = vmul.f32 0.6931472, %v2600_v17 }
 0x4bc   : > { %v2055_v51 = vadd.f32 %v2598_v62, %v2054_v12  ;;  %v2079_v54 = vadd.f32 %v2078_v60, %v2071_v24 }
 0x4be   : > { %v2059_v9 = vsel %vm2058_vm4, %v2598_v62, %v2055_v51  ;;  %2080 = vst.msk [vmem:[%s627_s25] sm:$0xff] %vm2066_vm1, %v2079_v54 }
 0x4bf   : > { %v2064_v37 = vsel %vm2061_vm5, %v2063_v28, %v2059_v9 }
 0x4c0   : > { %2067 = vst.msk [vmem:[%s623_s30] sm:$0xff] %vm2066_vm1, %v2064_v37 }
 0x4c1 PF: > { %s27_s21 = sadd.s32 1, %s2607_s21  }
 0x4c2   : > { %p24_p6 = scmp.ge.s32.totalorder %s27_s21, 4  }
 0x4c4   :  { %26 = sbr.rel (!%p24_p6) target bundleno = 2 (0x2), region = 137 }

</bundles_post_ra>
